<compile_context>
chip_gen: v5e
topology: v5e:2x2
jax: 0.10.0
libtpu: 0.0.40
codegen_flags: <defaults>
</compile_context>

<pallas_src>
import functools

import jax
import jax.numpy as jnp
from jax.experimental import pallas as pl
from jax.experimental.pallas import tpu as pltpu

# MATRES class weights (non-DPN branch)
temp_weights = [0.25 * 818.0 / 412.0, 0.25 * 818.0 / 263.0,
                0.25 * 818.0 / 30.0, 0.25 * 818.0 / 113.0]

LANES = 128
SUBLANES = 8


def _round_up(x, m):
    return (x + m - 1) // m * m


# ----------------------------------------------------------------------------
# Fused per-article kernel: attention contract + fc/tanh + block bilinear +
# classifier + weighted-CE partial sums.  One grid step == one article.
# ----------------------------------------------------------------------------
def _fused_article_kernel(e1a_ref, e2a_ref, seq_ref, e12_ref,
                          fcwe_ref, fcwc_ref, fcb_ref,
                          sel_ref, bilw_ref, bilb_ref, tgtw_ref,
                          logits_ref, bl_ref, lossp_ref,
                          *, out_class, block_size):
    p_pad = e1a_ref.shape[1]

    # ---- event-pair attention + contract('ld,rl->rd', seq, att) ----
    prod = e1a_ref[0] * e2a_ref[0]                        # bf16 VPU multiply [P,H,L]
    pa = jnp.mean(prod.astype(jnp.float32), axis=1)       # f32 head-mean     [P,L]
    denom = jnp.sum(pa, axis=1, keepdims=True) + 1e-5
    pa = pa / denom                                       # exact division (fidelity)
    ctr = jnp.dot(pa.astype(jnp.bfloat16), seq_ref[0],
                  preferred_element_type=jnp.float32)     # att @ seq -> [P, D]

    # ---- fc(cat([e, c])) = e @ W_e + c @ W_c + b ; e1/e2 rows stacked in one matmul ----
    e_proj = jnp.dot(e12_ref[0], fcwe_ref[...],
                     preferred_element_type=jnp.float32)  # [2P, D]
    c_proj = jnp.dot(ctr.astype(jnp.bfloat16), fcwc_ref[...],
                     preferred_element_type=jnp.float32)  # [P, D]
    bias = fcb_ref[...]                                   # [1, D]
    r1 = jnp.tanh(e_proj[:p_pad] + c_proj + bias)         # [P, D] f32
    r2 = jnp.tanh(e_proj[p_pad:] + c_proj + bias)

    # ---- block bilinear, b-major lane order:
    #      bl[n, b*D + d] = r1[n, d] * r2[n, (d//Bk)*Bk + b]
    # r1 factor: pure lane concatenation (no MXU); r2 factor: one 0/1-selector matmul.
    r1_rep = jnp.concatenate([r1] * block_size, axis=1)          # [P, Bk*D]
    r2_sel = jnp.dot(r2.astype(jnp.bfloat16), sel_ref[...],
                     preferred_element_type=jnp.float32)         # [P, Bk*D]
    bl = r1_rep * r2_sel
    bl_bf = bl.astype(jnp.bfloat16)
    bl_ref[0] = bl_bf                                            # bf16 HBM writeback

    # ---- classifier (lane-padded to 128) ----
    logits = jnp.dot(bl_bf, bilw_ref[...],
                     preferred_element_type=jnp.float32) + bilb_ref[...]   # [P, C_pad]
    logits_ref[0] = logits

    # ---- weighted CrossEntropy partial sums (padded pairs have zero weight) ----
    lane = jax.lax.broadcasted_iota(jnp.int32, logits.shape, 1)
    logits_m = jnp.where(lane < out_class, logits, jnp.float32(-1e30))
    m = jnp.max(logits_m, axis=1, keepdims=True)
    lse = jnp.log(jnp.sum(jnp.exp(logits_m - m), axis=1, keepdims=True)) + m  # [P,1]
    tgt = tgtw_ref[0]                                     # wi * onehot   [P, C_pad]
    wi = jnp.sum(tgt, axis=1, keepdims=True)              # [P,1] (0 on pad rows)
    picked_w = jnp.sum(logits * tgt, axis=1, keepdims=True)
    wnll = jnp.sum(wi * lse - picked_w, axis=0, keepdims=True)   # [1,1]  sum wi*nll
    wsum = jnp.sum(wi, axis=0, keepdims=True)                    # [1,1]  sum wi
    out_lane = jax.lax.broadcasted_iota(jnp.int32, (1, lossp_ref.shape[2]), 1)
    lossp_ref[0] = jnp.where(out_lane == 0, wnll,
                             jnp.where(out_lane == 1, wsum, 0.0))


# ----------------------------------------------------------------------------
# Host-side glue (gathers / parameter plumbing stay in plain JAX)
# ----------------------------------------------------------------------------
def gather_pairs(seq_out, attention, event_pos, event_pair):
    # TODO(synk): for long sequences this gather could move in-kernel via scalar-prefetch
    # + pl.Element row indexing on `attention` kept in pl.ANY.
    event_embs = jnp.take_along_axis(seq_out, event_pos[:, :, None], axis=1)      # [B,E,D]
    event_atts = jnp.take_along_axis(attention,
                                     event_pos[:, None, :, None], axis=2)         # [B,H,E,L]
    event_atts = jnp.transpose(event_atts, (0, 2, 1, 3))                          # [B,E,H,L]
    i1 = event_pair[..., 0] - 1
    i2 = event_pair[..., 1] - 1
    e1_embs = jnp.take_along_axis(event_embs, i1[:, :, None], axis=1)             # [B,P,D]
    e2_embs = jnp.take_along_axis(event_embs, i2[:, :, None], axis=1)
    e1_atts = jnp.take_along_axis(event_atts, i1[:, :, None, None], axis=1)       # [B,P,H,L]
    e2_atts = jnp.take_along_axis(event_atts, i2[:, :, None, None], axis=1)
    return e1_embs, e2_embs, e1_atts, e2_atts


def make_bcast_selector(D, Bk, dtype=jnp.bfloat16):
    """sel[d', b*D + d] = 1 iff d' == (d//Bk)*Bk + b  (within-block broadcast of lane b)."""
    k = jnp.arange(Bk * D)
    b = k // D
    d = k % D
    src = (d // Bk) * Bk + b
    return jax.nn.one_hot(src, D, dtype=dtype).T            # [D, Bk*D], exact 0/1 in bf16


def transformers_mlp_cons_forward(seq_out, attention, event_pos, event_pair,
                                  fc_w, fc_b, bil_w, bil_b, labels, block_size):
    B, L, D = seq_out.shape
    H = attention.shape[1]
    P = event_pair.shape[1]
    OUT = bil_w.shape[0]
    Bk = block_size
    assert D % Bk == 0, "emb_size must be divisible by block_size"

    P_pad = max(SUBLANES, _round_up(P, SUBLANES))            # sublane-aligned pair tile
    C_pad = LANES                                            # lane-dense classifier width

    e1_embs, e2_embs, e1_atts, e2_atts = gather_pairs(seq_out, attention,
                                                      event_pos, event_pair)

    def pad_pairs(x):
        pad = [(0, 0)] * x.ndim
        pad[1] = (0, P_pad - x.shape[1])
        return jnp.pad(x, pad)

    e1a = pad_pairs(e1_atts).astype(jnp.bfloat16)            # [B, P_pad, H, L]
    e2a = pad_pairs(e2_atts).astype(jnp.bfloat16)
    e12 = jnp.concatenate([pad_pairs(e1_embs), pad_pairs(e2_embs)],
                          axis=1).astype(jnp.bfloat16)       # [B, 2*P_pad, D]
    seq_bf = seq_out.astype(jnp.bfloat16)

    fcw_e = fc_w[:, :D].T.astype(jnp.bfloat16)               # [D, D]
    fcw_c = fc_w[:, D:].T.astype(jnp.bfloat16)               # [D, D]
    fcb = fc_b.reshape(1, D).astype(jnp.float32)

    sel = make_bcast_selector(D, Bk)                         # [D, Bk*D] bf16

    # bilinear weight rows permuted to the kernel's b-major bl lane order, lane-padded.
    bilw_alt = jnp.transpose(bil_w.reshape(OUT, D, Bk), (2, 1, 0)).reshape(Bk * D, OUT)
    bilw_pad = jnp.zeros((Bk * D, C_pad), jnp.bfloat16).at[:, :OUT].set(
        bilw_alt.astype(jnp.bfloat16))
    bilb_pad = jnp.zeros((1, C_pad), jnp.float32).at[:, :OUT].set(bil_b)

    # wi * onehot(labels): single pre-multiplied target array, zero on padded pairs.
    labels_bp = labels.reshape(B, P)
    w_vec = jnp.array(temp_weights, jnp.float32)
    tgt = jax.nn.one_hot(labels_bp, OUT, dtype=jnp.float32) * w_vec[labels_bp][..., None]
    tgt_pad = jnp.zeros((B, P_pad, C_pad), jnp.float32).at[:, :P, :OUT].set(tgt)

    # --- VMEM budget (resident weights + double-buffered per-article tiles) ---
    resident_bytes = (fcw_e.size + fcw_c.size + sel.size + bilw_pad.size) * 2 \
        + (fcb.size + bilb_pad.size) * 4
    tile_in_bytes = (2 * P_pad * H * L) * 2 + L * D * 2 + 2 * P_pad * D * 2 \
        + P_pad * C_pad * 4
    tile_out_bytes = P_pad * C_pad * 4 + P_pad * Bk * D * 2 + LANES * 4
    vmem_limit = int(min(2 * (resident_bytes + 2 * (tile_in_bytes + tile_out_bytes))
                         + (8 << 20), 120 << 20))

    # --- advisory cost estimate for XLA scheduling around the kernel ---
    flops = B * (2 * P_pad * H * L
                 + 2 * P_pad * L * D
                 + 2 * 3 * P_pad * D * D
                 + 2 * P_pad * D * (Bk * D)
                 + P_pad * Bk * D
                 + 2 * P_pad * (Bk * D) * C_pad)
    transcendentals = B * (2 * P_pad * D + P_pad * C_pad)
    bytes_accessed = (e1a.nbytes + e2a.nbytes + seq_bf.nbytes + e12.nbytes
                      + fcw_e.nbytes + fcw_c.nbytes + fcb.nbytes + sel.nbytes
                      + bilw_pad.nbytes + bilb_pad.nbytes + tgt_pad.nbytes
                      + B * P_pad * C_pad * 4 + B * P_pad * Bk * D * 2 + B * LANES * 4)

    kernel = functools.partial(_fused_article_kernel, out_class=OUT, block_size=Bk)

    # TODO(synk): per-article pair tile == P_pad; for articles with many pairs, add a
    #             second grid axis over pair-tiles (weights stay resident), and batch
    #             several small articles per step to fatten the tiny-M contract matmul.
    grid_spec = pltpu.PrefetchScalarGridSpec(
        num_scalar_prefetch=0,
        grid=(B,),
        in_specs=[
            pl.BlockSpec((1, P_pad, H, L), lambda b: (b, 0, 0, 0)),   # e1 attentions
            pl.BlockSpec((1, P_pad, H, L), lambda b: (b, 0, 0, 0)),   # e2 attentions
            pl.BlockSpec((1, L, D), lambda b: (b, 0, 0)),             # sequence output
            pl.BlockSpec((1, 2 * P_pad, D), lambda b: (b, 0, 0)),     # stacked e1/e2 embs
            pl.BlockSpec((D, D), lambda b: (0, 0)),                   # fc W (event half)
            pl.BlockSpec((D, D), lambda b: (0, 0)),                   # fc W (contract half)
            pl.BlockSpec((1, D), lambda b: (0, 0)),                   # fc bias
            pl.BlockSpec((D, Bk * D), lambda b: (0, 0)),              # r2 block-bcast sel
            pl.BlockSpec((Bk * D, C_pad), lambda b: (0, 0)),          # bilinear W (b-major)
            pl.BlockSpec((1, C_pad), lambda b: (0, 0)),               # bilinear bias
            pl.BlockSpec((1, P_pad, C_pad), lambda b: (b, 0, 0)),     # wi * onehot
        ],
        out_specs=[
            pl.BlockSpec((1, P_pad, C_pad), lambda b: (b, 0, 0)),     # logits
            pl.BlockSpec((1, P_pad, Bk * D), lambda b: (b, 0, 0)),    # bl (b-major, bf16)
            pl.BlockSpec((1, 1, LANES), lambda b: (b, 0, 0)),         # loss partials
        ],
    )

    logits_pad, bl_alt, loss_parts = pl.pallas_call(
        kernel,
        grid_spec=grid_spec,
        out_shape=(
            jax.ShapeDtypeStruct((B, P_pad, C_pad), jnp.float32),
            jax.ShapeDtypeStruct((B, P_pad, Bk * D), jnp.bfloat16),
            jax.ShapeDtypeStruct((B, 1, LANES), jnp.float32),
        ),
        compiler_params=pltpu.CompilerParams(
            dimension_semantics=("parallel",),
            vmem_limit_bytes=vmem_limit),
        cost_estimate=pl.CostEstimate(flops=int(flops),
                                      transcendentals=int(transcendentals),
                                      bytes_accessed=int(bytes_accessed)),
    )(e1a, e2a, seq_bf, e12, fcw_e, fcw_c, fcb, sel, bilw_pad, bilb_pad, tgt_pad)

    # slice away pair/class padding; restore canonical bl ordering (d-major, b-minor)
    logits = logits_pad[:, :P, :OUT].reshape(B * P, OUT)
    bl = jnp.transpose(bl_alt.reshape(B, P_pad, Bk, D)[:, :P], (0, 1, 3, 2))
    bl = bl.reshape(B * P, D * Bk).astype(jnp.float32)
    loss = jnp.sum(loss_parts[:, 0, 0]) / jnp.sum(loss_parts[:, 0, 1])
    return logits, bl, loss


# ----------------------------------------------------------------------------
# Pure-JAX reference (mirrors the PyTorch forward) for a sanity check
# ----------------------------------------------------------------------------
def reference_forward(seq_out, attention, event_pos, event_pair,
                      fc_w, fc_b, bil_w, bil_b, labels, block_size):
    B, L, D = seq_out.shape
    e1_embs, e2_embs, e1_atts, e2_atts = gather_pairs(seq_out, attention,
                                                      event_pos, event_pair)
    pa = jnp.mean(e1_atts * e2_atts, axis=2)
    pa = pa / (jnp.sum(pa, axis=-1, keepdims=True) + 1e-5)
    contract = jnp.einsum('bpl,bld->bpd', pa, seq_out)
    e1 = e1_embs.reshape(-1, D)
    e2 = e2_embs.reshape(-1, D)
    c = contract.reshape(-1, D)
    r1 = jnp.tanh(jnp.concatenate([e1, c], axis=1) @ fc_w.T + fc_b)
    r2 = jnp.tanh(jnp.concatenate([e2, c], axis=1) @ fc_w.T + fc_b)
    gb1 = r1.reshape(-1, D // block_size, block_size)
    gb2 = r2.reshape(-1, D // block_size, block_size)
    bl = (gb1[:, :, :, None] * gb2[:, :, None, :]).reshape(-1, D * block_size)
    logits = bl @ bil_w.T + bil_b
    w = jnp.array(temp_weights, dtype=jnp.float32)
    oh = jax.nn.one_hot(labels, bil_w.shape[0], dtype=jnp.float32)
    lse = jax.scipy.special.logsumexp(logits, axis=1)
    nll = lse - jnp.sum(logits * oh, axis=1)
    wi = w[labels]
    loss = jnp.sum(wi * nll) / jnp.sum(wi)
    return logits, bl, loss


if __name__ == "__main__":
    B, L, D, H = 2, 128, 128, 4       # batch, seq-len, emb_size, attention heads
    Bk = 8                            # block_size
    E, P = 3, 2                       # events / pairs per article
    OUT = 4                           # out_class (non-DPN)

    key = jax.random.PRNGKey(0)
    ks = jax.random.split(key, 6)
    seq_out = jax.random.normal(ks[0], (B, L, D), jnp.float32)
    attention = jax.nn.softmax(jax.random.normal(ks[1], (B, H, L, L), jnp.float32), axis=-1)
    event_pos = jnp.array([[5, 20, 77], [3, 50, 100]], dtype=jnp.int32)
    event_pair = jnp.array([[[1, 2], [2, 3]], [[1, 3], [3, 2]]], dtype=jnp.int32)  # 1-based
    labels = jnp.array([0, 2, 1, 3], dtype=jnp.int32)

    # deterministic parameter init (shapes per nn.Linear in __init__)
    fc_w = 0.05 * jax.random.normal(ks[2], (D, 2 * D), jnp.float32)      # fc: 2D -> D
    fc_b = 0.05 * jax.random.normal(ks[3], (D,), jnp.float32)
    bil_w = 0.05 * jax.random.normal(ks[4], (OUT, D * Bk), jnp.float32)  # bilinear: D*Bk -> 4
    bil_b = 0.05 * jax.random.normal(ks[5], (OUT,), jnp.float32)

    fwd = jax.jit(functools.partial(transformers_mlp_cons_forward, block_size=Bk))
    logits, bl, loss = fwd(seq_out, attention, event_pos, event_pair,
                           fc_w, fc_b, bil_w, bil_b, labels)
    jax.block_until_ready((logits, bl, loss))

    # Reference computed with full-f32 matmuls; the kernel intentionally uses bf16 MXU
    # operands (~2^-8 relative per operand, accumulated over K up to D*Bk=1024), so the
    # expected worst-case deviation is a few 1e-2.  Structural/permutation bugs would
    # produce O(1) errors, so a 1e-1 threshold is still a meaningful check.
    with jax.default_matmul_precision("highest"):
        ref_logits, ref_bl, ref_loss = reference_forward(
            seq_out, attention, event_pos, event_pair,
            fc_w, fc_b, bil_w, bil_b, labels=labels, block_size=Bk)
        jax.block_until_ready((ref_logits, ref_bl, ref_loss))

    err_logits = float(jnp.max(jnp.abs(logits - ref_logits)))
    err_bl = float(jnp.max(jnp.abs(bl - ref_bl)))
    err_loss = float(jnp.abs(loss - ref_loss))
    assert err_logits < 1e-1, f"logits mismatch: {err_logits}"
    assert err_bl < 1e-1, f"bl mismatch: {err_bl}"
    assert err_loss < 1e-1, f"loss mismatch: {err_loss}"

    print("KERNEL_OK")
</pallas_src>

<mosaic_0001>
module attributes {stable_mosaic.version = 11 : i64} {
  func.func @_fused_article_kernel(%arg0: i32, %arg1: memref<1x8x4x128xbf16, #tpu.memory_space<vmem>>, %arg2: memref<1x8x4x128xbf16, #tpu.memory_space<vmem>>, %arg3: memref<1x128x128xbf16, #tpu.memory_space<vmem>>, %arg4: memref<1x16x128xbf16, #tpu.memory_space<vmem>>, %arg5: memref<128x128xbf16, #tpu.memory_space<vmem>>, %arg6: memref<128x128xbf16, #tpu.memory_space<vmem>>, %arg7: memref<1x128xf32, #tpu.memory_space<vmem>>, %arg8: memref<128x1024xbf16, #tpu.memory_space<vmem>>, %arg9: memref<1024x128xbf16, #tpu.memory_space<vmem>>, %arg10: memref<1x128xf32, #tpu.memory_space<vmem>>, %arg11: memref<1x8x128xf32, #tpu.memory_space<vmem>>, %arg12: memref<1x8x128xf32, #tpu.memory_space<vmem>>, %arg13: memref<1x8x1024xbf16, #tpu.memory_space<vmem>>, %arg14: memref<1x1x128xf32, #tpu.memory_space<vmem>>) attributes {dimension_semantics = [#tpu.dimension_semantics<parallel>], iteration_bounds = array<i64: 2>, scalar_prefetch = 0 : i64, scratch_operands = 0 : i64, tpu.core_type = #tpu.core_type<tc>, window_params = [{transform_indices = @transform_0, window_bounds = array<i64: 1, 8, 4, 128>}, {transform_indices = @transform_1, window_bounds = array<i64: 1, 8, 4, 128>}, {transform_indices = @transform_2, window_bounds = array<i64: 1, 128, 128>}, {transform_indices = @transform_3, window_bounds = array<i64: 1, 16, 128>}, {pipeline_mode = #tpu.pipeline_mode<synchronous>, transform_indices = @transform_4, window_bounds = array<i64: 128, 128>}, {pipeline_mode = #tpu.pipeline_mode<synchronous>, transform_indices = @transform_5, window_bounds = array<i64: 128, 128>}, {pipeline_mode = #tpu.pipeline_mode<synchronous>, transform_indices = @transform_6, window_bounds = array<i64: 1, 128>}, {pipeline_mode = #tpu.pipeline_mode<synchronous>, transform_indices = @transform_7, window_bounds = array<i64: 128, 1024>}, {pipeline_mode = #tpu.pipeline_mode<synchronous>, transform_indices = @transform_8, window_bounds = array<i64: 1024, 128>}, {pipeline_mode = #tpu.pipeline_mode<synchronous>, transform_indices = @transform_9, window_bounds = array<i64: 1, 128>}, {transform_indices = @transform_10, window_bounds = array<i64: 1, 8, 128>}, {transform_indices = @transform_11, window_bounds = array<i64: 1, 8, 128>}, {transform_indices = @transform_12, window_bounds = array<i64: 1, 8, 1024>}, {transform_indices = @transform_13, window_bounds = array<i64: 1, 1, 128>}]} {
    %c0 = arith.constant 0 : index
    %c0_0 = arith.constant 0 : index
    %c0_1 = arith.constant 0 : index
    %c0_2 = arith.constant 0 : index
    %0 = vector.load %arg1[%c0, %c0_0, %c0_1, %c0_2] : memref<1x8x4x128xbf16, #tpu.memory_space<vmem>>, vector<1x8x4x128xbf16>
    %1 = vector.shape_cast %0 : vector<1x8x4x128xbf16> to vector<8x4x128xbf16>
    %c0_3 = arith.constant 0 : index
    %c0_4 = arith.constant 0 : index
    %c0_5 = arith.constant 0 : index
    %c0_6 = arith.constant 0 : index
    %2 = vector.load %arg2[%c0_3, %c0_4, %c0_5, %c0_6] : memref<1x8x4x128xbf16, #tpu.memory_space<vmem>>, vector<1x8x4x128xbf16>
    %3 = vector.shape_cast %2 : vector<1x8x4x128xbf16> to vector<8x4x128xbf16>
    %4 = arith.mulf %1, %3 : vector<8x4x128xbf16>
    %5 = arith.extf %4 : vector<8x4x128xbf16> to vector<8x4x128xf32>
    %cst = arith.constant dense<0.000000e+00> : vector<8x128xf32>
    %6 = vector.multi_reduction <add>, %5, %cst [1] : vector<8x4x128xf32> to vector<8x128xf32>
    %cst_7 = arith.constant 4.000000e+00 : f32
    %7 = vector.broadcast %cst_7 : f32 to vector<8x128xf32>
    %8 = arith.divf %6, %7 : vector<8x128xf32>
    %cst_8 = arith.constant dense<0.000000e+00> : vector<8xf32>
    %9 = vector.multi_reduction <add>, %8, %cst_8 [1] : vector<8x128xf32> to vector<8xf32>
    %10 = vector.shape_cast %9 : vector<8xf32> to vector<8x1xf32>
    %cst_9 = arith.constant 9.99999974E-6 : f32
    %11 = vector.broadcast %cst_9 : f32 to vector<8x1xf32>
    %12 = arith.addf %10, %11 : vector<8x1xf32>
    %13 = vector.broadcast %12 : vector<8x1xf32> to vector<8x128xf32>
    %14 = arith.divf %8, %13 : vector<8x128xf32>
    %15 = arith.truncf %14 : vector<8x128xf32> to vector<8x128xbf16>
    %c0_10 = arith.constant 0 : index
    %c0_11 = arith.constant 0 : index
    %c0_12 = arith.constant 0 : index
    %16 = vector.load %arg3[%c0_10, %c0_11, %c0_12] : memref<1x128x128xbf16, #tpu.memory_space<vmem>>, vector<1x128x128xbf16>
    %17 = vector.shape_cast %16 : vector<1x128x128xbf16> to vector<128x128xbf16>
    %cst_13 = arith.constant dense<0.000000e+00> : vector<8x128xf32>
    %18 = tpu.matmul %15, %17, %cst_13 {dimension_numbers = #tpu.dot_dimension_numbers<[1], [0], [0], [1], [0, 0, 1, 1], [], []>} : vector<8x128xbf16>, vector<128x128xbf16>, vector<8x128xf32> -> vector<8x128xf32>
    %c0_14 = arith.constant 0 : index
    %c0_15 = arith.constant 0 : index
    %c0_16 = arith.constant 0 : index
    %19 = vector.load %arg4[%c0_14, %c0_15, %c0_16] : memref<1x16x128xbf16, #tpu.memory_space<vmem>>, vector<1x16x128xbf16>
    %20 = vector.shape_cast %19 : vector<1x16x128xbf16> to vector<16x128xbf16>
    %c0_17 = arith.constant 0 : index
    %c0_18 = arith.constant 0 : index
    %21 = vector.load %arg5[%c0_17, %c0_18] : memref<128x128xbf16, #tpu.memory_space<vmem>>, vector<128x128xbf16>
    %cst_19 = arith.constant dense<0.000000e+00> : vector<16x128xf32>
    %22 = tpu.matmul %20, %21, %cst_19 {dimension_numbers = #tpu.dot_dimension_numbers<[1], [0], [0], [1], [0, 0, 1, 1], [], []>} : vector<16x128xbf16>, vector<128x128xbf16>, vector<16x128xf32> -> vector<16x128xf32>
    %23 = arith.truncf %18 : vector<8x128xf32> to vector<8x128xbf16>
    %c0_20 = arith.constant 0 : index
    %c0_21 = arith.constant 0 : index
    %24 = vector.load %arg6[%c0_20, %c0_21] : memref<128x128xbf16, #tpu.memory_space<vmem>>, vector<128x128xbf16>
    %cst_22 = arith.constant dense<0.000000e+00> : vector<8x128xf32>
    %25 = tpu.matmul %23, %24, %cst_22 {dimension_numbers = #tpu.dot_dimension_numbers<[1], [0], [0], [1], [0, 0, 1, 1], [], []>} : vector<8x128xbf16>, vector<128x128xbf16>, vector<8x128xf32> -> vector<8x128xf32>
    %c0_23 = arith.constant 0 : index
    %c0_24 = arith.constant 0 : index
    %26 = vector.load %arg7[%c0_23, %c0_24] : memref<1x128xf32, #tpu.memory_space<vmem>>, vector<1x128xf32>
    %27 = vector.extract_strided_slice %22 {offsets = [0, 0], sizes = [8, 128], strides = [1, 1]} : vector<16x128xf32> to vector<8x128xf32>
    %28 = arith.addf %27, %25 : vector<8x128xf32>
    %29 = vector.broadcast %26 : vector<1x128xf32> to vector<8x128xf32>
    %30 = arith.addf %28, %29 : vector<8x128xf32>
    %31 = math.tanh %30 : vector<8x128xf32>
    %32 = vector.extract_strided_slice %22 {offsets = [8, 0], sizes = [8, 128], strides = [1, 1]} : vector<16x128xf32> to vector<8x128xf32>
    %33 = arith.addf %32, %25 : vector<8x128xf32>
    %34 = vector.broadcast %26 : vector<1x128xf32> to vector<8x128xf32>
    %35 = arith.addf %33, %34 : vector<8x128xf32>
    %36 = math.tanh %35 : vector<8x128xf32>
    %37 = tpu.concatenate %31, %31, %31, %31, %31, %31, %31, %31 in 1 : vector<8x128xf32>, vector<8x128xf32>, vector<8x128xf32>, vector<8x128xf32>, vector<8x128xf32>, vector<8x128xf32>, vector<8x128xf32>, vector<8x128xf32> -> vector<8x1024xf32>
    %38 = arith.truncf %36 : vector<8x128xf32> to vector<8x128xbf16>
    %c0_25 = arith.constant 0 : index
    %c0_26 = arith.constant 0 : index
    %39 = vector.load %arg8[%c0_25, %c0_26] : memref<128x1024xbf16, #tpu.memory_space<vmem>>, vector<128x1024xbf16>
    %cst_27 = arith.constant dense<0.000000e+00> : vector<8x1024xf32>
    %40 = tpu.matmul %38, %39, %cst_27 {dimension_numbers = #tpu.dot_dimension_numbers<[1], [0], [0], [1], [0, 0, 1, 1], [], []>} : vector<8x128xbf16>, vector<128x1024xbf16>, vector<8x1024xf32> -> vector<8x1024xf32>
    %41 = arith.mulf %37, %40 : vector<8x1024xf32>
    %42 = arith.truncf %41 : vector<8x1024xf32> to vector<8x1024xbf16>
    %c0_28 = arith.constant 0 : index
    %c0_29 = arith.constant 0 : index
    %c0_30 = arith.constant 0 : index
    %43 = vector.load %arg13[%c0_28, %c0_29, %c0_30] : memref<1x8x1024xbf16, #tpu.memory_space<vmem>>, vector<1x8x1024xbf16>
    %44 = vector.shape_cast %43 : vector<1x8x1024xbf16> to vector<8x1024xbf16>
    %45 = vector.shape_cast %42 : vector<8x1024xbf16> to vector<1x8x1024xbf16>
    tpu.vector_store %arg13[%c0_28, %c0_29, %c0_30], %45 {strides = array<i32>} : memref<1x8x1024xbf16, #tpu.memory_space<vmem>>, vector<1x8x1024xbf16>,
    %c0_31 = arith.constant 0 : index
    %c0_32 = arith.constant 0 : index
    %46 = vector.load %arg9[%c0_31, %c0_32] : memref<1024x128xbf16, #tpu.memory_space<vmem>>, vector<1024x128xbf16>
    %cst_33 = arith.constant dense<0.000000e+00> : vector<8x128xf32>
    %47 = tpu.matmul %42, %46, %cst_33 {dimension_numbers = #tpu.dot_dimension_numbers<[1], [0], [0], [1], [0, 0, 1, 1], [], []>} : vector<8x1024xbf16>, vector<1024x128xbf16>, vector<8x128xf32> -> vector<8x128xf32>
    %c0_34 = arith.constant 0 : index
    %c0_35 = arith.constant 0 : index
    %48 = vector.load %arg10[%c0_34, %c0_35] : memref<1x128xf32, #tpu.memory_space<vmem>>, vector<1x128xf32>
    %49 = vector.broadcast %48 : vector<1x128xf32> to vector<8x128xf32>
    %50 = arith.addf %47, %49 : vector<8x128xf32>
    %c0_36 = arith.constant 0 : index
    %c0_37 = arith.constant 0 : index
    %c0_38 = arith.constant 0 : index
    %51 = vector.load %arg12[%c0_36, %c0_37, %c0_38] : memref<1x8x128xf32, #tpu.memory_space<vmem>>, vector<1x8x128xf32>
    %52 = vector.shape_cast %51 : vector<1x8x128xf32> to vector<8x128xf32>
    %53 = vector.shape_cast %50 : vector<8x128xf32> to vector<1x8x128xf32>
    tpu.vector_store %arg12[%c0_36, %c0_37, %c0_38], %53 {strides = array<i32>} : memref<1x8x128xf32, #tpu.memory_space<vmem>>, vector<1x8x128xf32>,
    %54 = tpu.iota {dimensions = array<i32: 1>} : vector<8x128xi32>
    %c4_i32 = arith.constant 4 : i32
    %55 = vector.broadcast %c4_i32 : i32 to vector<8x128xi32>
    %56 = arith.cmpi slt, %54, %55 : vector<8x128xi32>
    %cst_39 = arith.constant -1.000000e+30 : f32
    %57 = vector.broadcast %cst_39 : f32 to vector<8x128xf32>
    %58 = arith.select %56, %50, %57 : vector<8x128xi1>, vector<8x128xf32>
    %cst_40 = arith.constant dense<0xFF800000> : vector<8xf32>
    %59 = vector.multi_reduction <maximumf>, %58, %cst_40 [1] : vector<8x128xf32> to vector<8xf32>
    %60 = vector.shape_cast %59 : vector<8xf32> to vector<8x1xf32>
    %61 = vector.broadcast %60 : vector<8x1xf32> to vector<8x128xf32>
    %62 = arith.subf %58, %61 : vector<8x128xf32>
    %63 = math.exp %62 : vector<8x128xf32>
    %cst_41 = arith.constant dense<0.000000e+00> : vector<8xf32>
    %64 = vector.multi_reduction <add>, %63, %cst_41 [1] : vector<8x128xf32> to vector<8xf32>
    %65 = vector.shape_cast %64 : vector<8xf32> to vector<8x1xf32>
    %66 = math.log %65 : vector<8x1xf32>
    %67 = arith.addf %66, %60 : vector<8x1xf32>
    %c0_42 = arith.constant 0 : index
    %c0_43 = arith.constant 0 : index
    %c0_44 = arith.constant 0 : index
    %68 = vector.load %arg11[%c0_42, %c0_43, %c0_44] : memref<1x8x128xf32, #tpu.memory_space<vmem>>, vector<1x8x128xf32>
    %69 = vector.shape_cast %68 : vector<1x8x128xf32> to vector<8x128xf32>
    %cst_45 = arith.constant dense<0.000000e+00> : vector<8xf32>
    %70 = vector.multi_reduction <add>, %69, %cst_45 [1] : vector<8x128xf32> to vector<8xf32>
    %71 = vector.shape_cast %70 : vector<8xf32> to vector<8x1xf32>
    %72 = arith.mulf %50, %69 : vector<8x128xf32>
    %cst_46 = arith.constant dense<0.000000e+00> : vector<8xf32>
    %73 = vector.multi_reduction <add>, %72, %cst_46 [1] : vector<8x128xf32> to vector<8xf32>
    %74 = vector.shape_cast %73 : vector<8xf32> to vector<8x1xf32>
    %75 = arith.mulf %71, %67 : vector<8x1xf32>
    %76 = arith.subf %75, %74 : vector<8x1xf32>
    %cst_47 = arith.constant dense<0.000000e+00> : vector<1xf32>
    %77 = vector.multi_reduction <add>, %76, %cst_47 [0] : vector<8x1xf32> to vector<1xf32>
    %78 = vector.shape_cast %77 : vector<1xf32> to vector<1x1xf32>
    %cst_48 = arith.constant dense<0.000000e+00> : vector<1xf32>
    %79 = vector.multi_reduction <add>, %71, %cst_48 [0] : vector<8x1xf32> to vector<1xf32>
    %80 = vector.shape_cast %79 : vector<1xf32> to vector<1x1xf32>
    %81 = tpu.iota {dimensions = array<i32: 1>} : vector<1x128xi32>
    %c0_i32 = arith.constant 0 : i32
    %82 = vector.broadcast %c0_i32 : i32 to vector<1x128xi32>
    %83 = arith.cmpi eq, %81, %82 : vector<1x128xi32>
    %c1_i32 = arith.constant 1 : i32
    %84 = vector.broadcast %c1_i32 : i32 to vector<1x128xi32>
    %85 = arith.cmpi eq, %81, %84 : vector<1x128xi32>
    %cst_49 = arith.constant 0.000000e+00 : f32
    %86 = vector.shape_cast %80 : vector<1x1xf32> to vector<1x1xf32>
    %87 = vector.broadcast %86 : vector<1x1xf32> to vector<1x128xf32>
    %88 = vector.broadcast %cst_49 : f32 to vector<1x128xf32>
    %89 = arith.select %85, %87, %88 : vector<1x128xi1>, vector<1x128xf32>
    %90 = vector.shape_cast %78 : vector<1x1xf32> to vector<1x1xf32>
    %91 = vector.broadcast %90 : vector<1x1xf32> to vector<1x128xf32>
    %92 = arith.select %83, %91, %89 : vector<1x128xi1>, vector<1x128xf32>
    %c0_50 = arith.constant 0 : index
    %c0_51 = arith.constant 0 : index
    %c0_52 = arith.constant 0 : index
    %93 = vector.load %arg14[%c0_50, %c0_51, %c0_52] : memref<1x1x128xf32, #tpu.memory_space<vmem>>, vector<1x1x128xf32>
    %94 = vector.shape_cast %93 : vector<1x1x128xf32> to vector<1x128xf32>
    %95 = vector.shape_cast %92 : vector<1x128xf32> to vector<1x1x128xf32>
    tpu.vector_store %arg14[%c0_50, %c0_51, %c0_52], %95 {strides = array<i32>} : memref<1x1x128xf32, #tpu.memory_space<vmem>>, vector<1x1x128xf32>,
    return
  }
  func.func @transform_0(%arg0: i32) -> (i32, i32, i32, i32) {
    %c0_i32 = arith.constant 0 : i32
    %c0_i32_0 = arith.constant 0 : i32
    %c0_i32_1 = arith.constant 0 : i32
    %c0_i32_2 = arith.constant 0 : i32
    return %arg0, %c0_i32, %c0_i32_0, %c0_i32_1 : i32, i32, i32, i32
  }
  func.func @transform_1(%arg0: i32) -> (i32, i32, i32, i32) {
    %c0_i32 = arith.constant 0 : i32
    %c0_i32_0 = arith.constant 0 : i32
    %c0_i32_1 = arith.constant 0 : i32
    %c0_i32_2 = arith.constant 0 : i32
    return %arg0, %c0_i32, %c0_i32_0, %c0_i32_1 : i32, i32, i32, i32
  }
  func.func @transform_2(%arg0: i32) -> (i32, i32, i32) {
    %c0_i32 = arith.constant 0 : i32
    %c0_i32_0 = arith.constant 0 : i32
    %c0_i32_1 = arith.constant 0 : i32
    return %arg0, %c0_i32, %c0_i32_0 : i32, i32, i32
  }
  func.func @transform_3(%arg0: i32) -> (i32, i32, i32) {
    %c0_i32 = arith.constant 0 : i32
    %c0_i32_0 = arith.constant 0 : i32
    %c0_i32_1 = arith.constant 0 : i32
    return %arg0, %c0_i32, %c0_i32_0 : i32, i32, i32
  }
  func.func @transform_4(%arg0: i32) -> (i32, i32) {
    %c0_i32 = arith.constant 0 : i32
    %c0_i32_0 = arith.constant 0 : i32
    %c0_i32_1 = arith.constant 0 : i32
    return %c0_i32, %c0_i32_0 : i32, i32
  }
  func.func @transform_5(%arg0: i32) -> (i32, i32) {
    %c0_i32 = arith.constant 0 : i32
    %c0_i32_0 = arith.constant 0 : i32
    %c0_i32_1 = arith.constant 0 : i32
    return %c0_i32, %c0_i32_0 : i32, i32
  }
  func.func @transform_6(%arg0: i32) -> (i32, i32) {
    %c0_i32 = arith.constant 0 : i32
    %c0_i32_0 = arith.constant 0 : i32
    %c0_i32_1 = arith.constant 0 : i32
    return %c0_i32, %c0_i32_0 : i32, i32
  }
  func.func @transform_7(%arg0: i32) -> (i32, i32) {
    %c0_i32 = arith.constant 0 : i32
    %c0_i32_0 = arith.constant 0 : i32
    %c0_i32_1 = arith.constant 0 : i32
    return %c0_i32, %c0_i32_0 : i32, i32
  }
  func.func @transform_8(%arg0: i32) -> (i32, i32) {
    %c0_i32 = arith.constant 0 : i32
    %c0_i32_0 = arith.constant 0 : i32
    %c0_i32_1 = arith.constant 0 : i32
    return %c0_i32, %c0_i32_0 : i32, i32
  }
  func.func @transform_9(%arg0: i32) -> (i32, i32) {
    %c0_i32 = arith.constant 0 : i32
    %c0_i32_0 = arith.constant 0 : i32
    %c0_i32_1 = arith.constant 0 : i32
    return %c0_i32, %c0_i32_0 : i32, i32
  }
  func.func @transform_10(%arg0: i32) -> (i32, i32, i32) {
    %c0_i32 = arith.constant 0 : i32
    %c0_i32_0 = arith.constant 0 : i32
    %c0_i32_1 = arith.constant 0 : i32
    return %arg0, %c0_i32, %c0_i32_0 : i32, i32, i32
  }
  func.func @transform_11(%arg0: i32) -> (i32, i32, i32) {
    %c0_i32 = arith.constant 0 : i32
    %c0_i32_0 = arith.constant 0 : i32
    %c0_i32_1 = arith.constant 0 : i32
    return %arg0, %c0_i32, %c0_i32_0 : i32, i32, i32
  }
  func.func @transform_12(%arg0: i32) -> (i32, i32, i32) {
    %c0_i32 = arith.constant 0 : i32
    %c0_i32_0 = arith.constant 0 : i32
    %c0_i32_1 = arith.constant 0 : i32
    return %arg0, %c0_i32, %c0_i32_0 : i32, i32, i32
  }
  func.func @transform_13(%arg0: i32) -> (i32, i32, i32) {
    %c0_i32 = arith.constant 0 : i32
    %c0_i32_0 = arith.constant 0 : i32
    %c0_i32_1 = arith.constant 0 : i32
    return %arg0, %c0_i32, %c0_i32_0 : i32, i32, i32
  }
}

</mosaic_0001>

<bundles_post_ra>
// kernel: eq.17
= control target key start
LH: loop header
LB: loop body
LE: loop exit
PB: predicated region body
PF: predicated region fallthrough
CT: control target
= control target key end

     0   :  { %vm7_vm0 = vcmask 15360   ;;  %s39_s0 = inlined_call_operand.vmem [shape: s32[4], index: 0, kind: input, shape index: {}]   ;;  %s40_s1 = inlined_call_operand.vmem [shape: s32[2,2], index: 1, kind: output, shape index: {}]  }
   0x1   :  { %v4_v0 = vld [vmem:[%s39_s0] sm:$0x1]  ;;  %s22_s0 = smov 126  }
   0x2   :  { %5 = vst [vmem:[#allocation1] sm:$0x1] %v4_v0 }
   0x9   :  { %v9_v1 = vld [vmem:[#allocation1] sm:$0x1]  }
   0xa   :  { %v6_v2 = vld [vmem:[#allocation1] sm:$0x1]   ;;  %10 = vrot.lane.b32.xlu0 %v9_v1, %s22_s0 }
   0xb   :  { %8 = vst.msk [vmem:[#allocation0] sm:$0x1] %vm7_vm0, %v6_v2  }
  0x7c   :  { %v11_v3 = vpop.permute.xlu0 %10  }
  0x7d   :  { %14 = vst.msk [vmem:[#allocation0 + $0x1] sm:$0x1] %vm7_vm0, %v11_v3  }
  0x84   :  { %v17_v4 = vld [vmem:[#allocation0] sm:$0x3] }
  0x85   :  { %20 = vst [vmem:[%s40_s1] sm:$0x3] %v17_v4 }

// kernel: transformers_mlp_cons_forward.1
= control target key start
LH: loop header
LB: loop body
LE: loop exit
PB: predicated region body
PF: predicated region fallthrough
CT: control target
= control target key end

     0   :  { %s3375_s25 = smov 0   ;;  %s4263_s0 = inlined_call_operand.vmem [shape: bf16[2,8,4,128], index: 0, kind: input, shape index: {}]   ;;  %s4264_s1 = inlined_call_operand.vmem [shape: bf16[2,8,4,128], index: 1, kind: input, shape index: {}]   ;;  %s4265_s2 = inlined_call_operand.vmem [shape: bf16[2,128,128], index: 2, kind: input, shape index: {}]   ;;  %s4266_s3 = inlined_call_operand.vmem [shape: bf16[2,16,128], index: 3, kind: input, shape index: {}]   ;;  %s4267_s4 = inlined_call_operand.vmem [shape: bf16[128,128], index: 4, kind: input, shape index: {}]   ;;  %s4268_s5 = inlined_call_operand.vmem [shape: bf16[128,128], index: 5, kind: input, shape index: {}]   ;;  %s4269_s6 = inlined_call_operand.vmem [shape: f32[1,128], index: 6, kind: input, shape index: {}]   ;;  %s4270_s7 = inlined_call_operand.vmem [shape: bf16[128,1024], index: 7, kind: input, shape index: {}]   ;;  %s4271_s8 = inlined_call_operand.vmem [shape: bf16[1024,128], index: 8, kind: input, shape index: {}]   ;;  %s4272_s9 = inlined_call_operand.vmem [shape: f32[1,128], index: 9, kind: input, shape index: {}]   ;;  %s4273_s10 = inlined_call_operand.vmem [shape: f32[2,8,128], index: 10, kind: input, shape index: {}]   ;;  %s4274_s11 = inlined_call_operand.vmem [shape: f32[2,8,128], index: 11, kind: output, shape index: {0}]   ;;  %s4275_s12 = inlined_call_operand.vmem [shape: bf16[2,8,1024], index: 12, kind: output, shape index: {1}]   ;;  %s4276_s13 = inlined_call_operand.vmem [shape: f32[2,1,128], index: 13, kind: output, shape index: {2}]  }
   0x1 LB: > { %s2470_s26 = sadd.s32 4294967295, %s3302_s25   ;;  %p2474_p0 = scmp.ge.s32.totalorder %s3302_s25, 1  ;;  %s3302_s25 = sphi %s3375_s25, %s24_s25  }
   0x2   : > { %p431_p1 = scmp.lt.s32.totalorder %s3302_s25, 3 }
   0x4   : > { %p432_p2 = pnand %p2474_p0, %p431_p1 }
   0x5   : > { %p501_p3 = scmp.lt.s32.totalorder (!%p432_p2), %s2470_s26, 1 }
   0x6   : > { %435 = sbr.rel (%p432_p2) target bundleno = 1062 (0x426), region = 64 }
   0xb   : > { %s4306_s26 = smov (!%p501_p3, %s2470_s26), 1  ;;  %vm593_vm0 = vcmask 1043456   ;;  %v3304_v13 = vmov 4.0   ;;  %vm673_vm2 = vcmask 1041409   ;;  %vm4282_vm3 = vcmask 1042434  }
   0xc   : > { %s3101_s27 = sshll.u32 %s4306_s26, 4  ;;  %3270 = vrcp.f32 %v3304_v13  ;;  %vm4281_vm4 = vcmask 1043459   ;;  %vm4280_vm5 = vcmask 1044484   ;;  %vm4279_vm6 = vcmask 1045509   ;;  %s3103_s17 = sshll.u32 %s4306_s26, 6 }
   0xd   : > { %s505_s30 = scalar_lea.vmem %s4263_s0, %s3101_s27  ;;  %s3392_s16 = scalar_lea.vmem %s4264_s1, %s3101_s27  ;;  %vm4278_vm7 = vcmask 1046534   ;;  %vm4277_vm8 = vcmask 1047559  }
   0xe   : > { %v537_v0 = vld [vmem:[%s505_s30] sm:$0x3]  ;;  %v538_v1 = vld [vmem:[%s505_s30 + $0x2] sm:$0x3]  ;;  %v539_v2 = vld [vmem:[%s505_s30 + $0x4] sm:$0x3]  ;;  %s515_s20 = scalar_lea.vmem %s4265_s2, %s3103_s17 }
   0xf   : > { %v540_v3 = vld [vmem:[%s505_s30 + $0x6] sm:$0x3]  ;;  %v541_v4 = vld [vmem:[%s505_s30 + $0x8] sm:$0x3]  ;;  %v542_v5 = vld [vmem:[%s505_s30 + $0xa] sm:$0x3]  ;;  %v553_v6 = vunpack.c.l.bf16 %v537_v0  ;;  %v554_v10 = vunpack.c.l.bf16 %v538_v1  ;;  %v555_v11 = vunpack.c.l.bf16 %v539_v2 }
  0x10   : > { %v543_v7 = vld [vmem:[%s505_s30 + $0xc] sm:$0x3]  ;;  %v544_v8 = vld [vmem:[%s505_s30 + $0xe] sm:$0x3]  ;;  %v545_v9 = vld [vmem:[%s3392_s16] sm:$0x3]  ;;  %v556_v12 = vunpack.c.l.bf16 %v540_v3  ;;  %v557_v17 = vunpack.c.l.bf16 %v541_v4  ;;  %v558_v18 = vunpack.c.l.bf16 %v542_v5 }
  0x11   : > { %v546_v14 = vld [vmem:[%s3392_s16 + $0x2] sm:$0x3]  ;;  %v547_v15 = vld [vmem:[%s3392_s16 + $0x4] sm:$0x3]  ;;  %v548_v16 = vld [vmem:[%s3392_s16 + $0x6] sm:$0x3]  ;;  %v559_v19 = vunpack.c.l.bf16 %v543_v7  ;;  %v561_v20 = vunpack.c.l.bf16 %v545_v9  ;;  %v560_v24 = vunpack.c.l.bf16 %v544_v8 }
  0x12   : > { %v549_v21 = vld [vmem:[%s3392_s16 + $0x8] sm:$0x3]  ;;  %v550_v22 = vld [vmem:[%s3392_s16 + $0xa] sm:$0x3]  ;;  %v551_v23 = vld [vmem:[%s3392_s16 + $0xc] sm:$0x3]  ;;  %v562_v25 = vunpack.c.l.bf16 %v546_v14  ;;  %v563_v26 = vunpack.c.l.bf16 %v547_v15  ;;  %v564_v27 = vunpack.c.l.bf16 %v548_v16  ;;  %v3402_v41 = vpop.eup %3270 }
  0x13   : > { %v552_v28 = vld [vmem:[%s3392_s16 + $0xe] sm:$0x3]  ;;  %v565_v29 = vunpack.c.l.bf16 %v549_v21  ;;  %v566_v30 = vunpack.c.l.bf16 %v550_v22  ;;  %v567_v31 = vunpack.c.l.bf16 %v551_v23  ;;  %v569_v32 = vmul.f32 %v561_v20, %v553_v6  ;;  %s3636_s17 = sshll.u32 %s4306_s26, 3  ;;  %s3105_s21 = sshll.u32 %s4306_s26, 5 }
  0x14   : > { %v568_v33 = vunpack.c.l.bf16 %v552_v28  ;;  %v570_v34 = vmul.f32 %v562_v25, %v554_v10  ;;  %v571_v35 = vmul.f32 %v563_v26, %v555_v11  ;;  %v572_v36 = vmul.f32 %v564_v27, %v556_v12  ;;  %s520_s24 = scalar_lea.vmem %s4266_s3, %s3636_s17  ;;  %s524_s14 = scalar_lea.vmem %s4273_s10, %s3636_s17 }
  0x15   : > { %v573_v37 = vmul.f32 %v565_v29, %v557_v17  ;;  %v574_v38 = vmul.f32 %v566_v30, %v558_v18  ;;  %v575_v39 = vmul.f32 %v567_v31, %v559_v19  ;;  %v577_v40 = vpack.c.bf16 %v569_v32, %v569_v32  ;;  %s528_s18 = scalar_lea.vmem %s4274_s11, %s3636_s17 }
  0x16   : > { %v576_v42 = vmul.f32 %v568_v33, %v560_v24  ;;  %v578_v43 = vpack.c.bf16 %v570_v34, %v570_v34  ;;  %v579_v44 = vpack.c.bf16 %v571_v35, %v571_v35  ;;  %v580_v45 = vpack.c.bf16 %v572_v36, %v572_v36 }
  0x17   : > { %v581_v46 = vpack.c.bf16 %v573_v37, %v573_v37  ;;  %v582_v47 = vpack.c.bf16 %v574_v38, %v574_v38  ;;  %v583_v48 = vpack.c.bf16 %v575_v39, %v575_v39  ;;  %v585_v49 = vunpack.c.l.bf16 %v577_v40 }
  0x18   : > { %v584_v50 = vpack.c.bf16 %v576_v42, %v576_v42  ;;  %v586_v51 = vunpack.c.l.bf16 %v578_v43  ;;  %v587_v52 = vunpack.c.l.bf16 %v579_v44  ;;  %v588_v53 = vunpack.c.l.bf16 %v580_v45 }
  0x19   : > { %v589_v54 = vunpack.c.l.bf16 %v581_v46  ;;  %v590_v55 = vunpack.c.l.bf16 %v582_v47  ;;  %v591_v56 = vunpack.c.l.bf16 %v583_v48  ;;  %v594_v57 = vsel %vm593_vm0, %v585_v49, 0.0 }
  0x1a   : > { %v592_v58 = vunpack.c.l.bf16 %v584_v50  ;;  %v595_v59 = vrot.slane %v594_v57, 4  ;;  %v601_v60 = vsel %vm593_vm0, %v586_v51, 0.0  ;;  %v608_v61 = vsel %vm593_vm0, %v587_v52, 0.0 }
  0x1b   : > { %v602_v62 = vrot.slane %v601_v60, 4  ;;  %v609_v63 = vrot.slane %v608_v61, 4  ;;  %v615_v0 = vsel %vm593_vm0, %v588_v53, 0.0  ;;  %v622_v1 = vsel %vm593_vm0, %v589_v54, 0.0 }
  0x1c   : > { %v596_v2 = vadd.f32 %v595_v59, %v594_v57  ;;  %v616_v3 = vrot.slane %v615_v0, 4  ;;  %v623_v4 = vrot.slane %v622_v1, 4  ;;  %v629_v5 = vsel %vm593_vm0, %v590_v55, 0.0 }
  0x1d   : > { %v603_v6 = vadd.f32 %v602_v62, %v601_v60  ;;  %v610_v7 = vadd.f32 %v609_v63, %v608_v61  ;;  %v630_v8 = vrot.slane %v629_v5, 4  ;;  %v636_v9 = vsel %vm593_vm0, %v591_v56, 0.0 }
  0x1e   : > { %v597_v10 = vrot.slane %v596_v2, 2  ;;  %v617_v11 = vadd.f32 %v616_v3, %v615_v0  ;;  %v624_v12 = vadd.f32 %v623_v4, %v622_v1  ;;  %v637_v13 = vrot.slane %v636_v9, 4 }
  0x1f   : > { %v604_v14 = vrot.slane %v603_v6, 2  ;;  %v611_v15 = vrot.slane %v610_v7, 2  ;;  %v631_v16 = vadd.f32 %v630_v8, %v629_v5  ;;  %v643_v17 = vsel %vm593_vm0, %v592_v58, 0.0  ;;  %v3111_v8 = vld [vmem:[%s515_s20 + $0x28] sm:$0xff] }
  0x20   : > { %v618_v18 = vrot.slane %v617_v11, 2  ;;  %v625_v19 = vrot.slane %v624_v12, 2  ;;  %v638_v20 = vadd.f32 %v637_v13, %v636_v9  ;;  %v644_v22 = vrot.slane %v643_v17, 4  ;;  %v3110_v9 = vld [vmem:[%s515_s20 + $0x20] sm:$0xff] }
  0x21   : > { %v632_v21 = vrot.slane %v631_v16, 2  ;;  %v598_v23 = vadd.f32 %v597_v10, %v596_v2  ;;  %v605_v25 = vadd.f32 %v604_v14, %v603_v6  ;;  %v612_v26 = vadd.f32 %v611_v15, %v610_v7  ;;  %v3113_v6 = vld [vmem:[%s515_s20 + $0x38] sm:$0xff]  ;;  %v3112_v7 = vld [vmem:[%s515_s20 + $0x30] sm:$0xff]  ;;  %v3106_v13 = vld [vmem:[%s515_s20] sm:$0xff] }
  0x22   : > { %v639_v24 = vrot.slane %v638_v20, 2  ;;  %v619_v27 = vadd.f32 %v618_v18, %v617_v11  ;;  %v645_v28 = vadd.f32 %v644_v22, %v643_v17  ;;  %v626_v29 = vadd.f32 %v625_v19, %v624_v12  ;;  %931 = vmatpush.bf16.msra.mxu0 %v3113_v6  ;;  %v3109_v10 = vld [vmem:[%s515_s20 + $0x18] sm:$0xff]  ;;  %v3108_v11 = vld [vmem:[%s515_s20 + $0x10] sm:$0xff]  ;;  %v3107_v12 = vld [vmem:[%s515_s20 + $0x8] sm:$0xff]  ;;  %s536_s20 = scalar_lea.vmem %s4276_s13, %s4306_s26 }
  0x23   : > { %v633_v30 = vadd.f32 %v632_v21, %v631_v16  ;;  %v599_v32 = vrot.slane %v598_v23, 1  ;;  %v651_v34 = vmul.f32 4.0, %v3402_v41  ;;  %v606_v35 = vrot.slane %v605_v25, 1 }
  0x24   : > { %v646_v31 = vrot.slane %v645_v28, 2  ;;  %v640_v33 = vadd.f32 %v639_v24, %v638_v20  ;;  %v613_v36 = vrot.slane %v612_v26, 1  ;;  %v620_v37 = vrot.slane %v619_v27, 1 }
  0x25   : > { %v627_v39 = vrot.slane %v626_v29, 1  ;;  %v652_v40 = vsub.f32 1.0, %v651_v34  ;;  %v634_v42 = vrot.slane %v633_v30, 1  ;;  %vm655_vm1 = vweird.f32 %v3402_v41 }
  0x26   : > { %v647_v38 = vadd.f32 %v646_v31, %v645_v28  ;;  %v641_v43 = vrot.slane %v640_v33, 1  ;;  %v600_v46 = vadd.f32 %v599_v32, %v598_v23  ;;  %v607_v47 = vadd.f32 %v606_v35, %v605_v25  ;;  %932 = vmatpush.bf16.msra.mxu0 %v3112_v7 }
  0x27   : > { %v653_v45 = vmul.f32 %v3402_v41, %v652_v40  ;;  %v614_v48 = vadd.f32 %v613_v36, %v612_v26  ;;  %v621_v49 = vadd.f32 %v620_v37, %v619_v27  ;;  %v628_v50 = vadd.f32 %v627_v39, %v626_v29  ;;  %v3129_v40 = vld [vmem:[%s4268_s5 + $0x30] sm:$0xff] }
  0x28   : > { %v648_v44 = vrot.slane %v647_v38, 1  ;;  %v635_v52 = vadd.f32 %v634_v42, %v633_v30  ;;  %v642_v53 = vadd.f32 %v641_v43, %v640_v33 }
  0x29   : > { %v654_v51 = vadd.f32 %v3402_v41, %v653_v45 }
  0x2a   : > { %v649_v54 = vadd.f32 %v648_v44, %v647_v38  ;;  %933 = vmatpush.bf16.msra.mxu0 %v3111_v8 }
  0x2b   : > { %v656_v55 = vsel %vm655_vm1, %v3402_v41, %v654_v51 }
  0x2c   : > { %v3417_v56 = vmul.f32 %v656_v55, %v600_v46  ;;  %v3419_v57 = vmul.f32 %v656_v55, %v607_v47  ;;  %v3421_v58 = vmul.f32 %v656_v55, %v614_v48  ;;  %v3423_v59 = vmul.f32 %v656_v55, %v621_v49 }
  0x2d   : > { %v3425_v60 = vmul.f32 %v656_v55, %v628_v50  ;;  %v3427_v61 = vmul.f32 %v656_v55, %v635_v52  ;;  %v3432_v41 = vmul.f32 %v656_v55, %v642_v53  ;;  %v3436_v0 = vmul.f32 %v656_v55, %v649_v54 }
  0x2e   : > { %v674_v62 = vsel %vm673_vm2, %v3419_v57, %v3417_v56  ;;  %934 = vmatpush.bf16.msra.mxu0 %v3110_v9 }
  0x2f   : > { %v676_v63 = vsel %vm4282_vm3, %v3421_v58, %v674_v62 }
  0x30   : > { %v678_v1 = vsel %vm4281_vm4, %v3423_v59, %v676_v63 }
  0x31   : > { %v680_v2 = vsel %vm4280_vm5, %v3425_v60, %v678_v1 }
  0x32   : > { %v682_v3 = vsel %vm4279_vm6, %v3427_v61, %v680_v2  ;;  %935 = vmatpush.bf16.msra.mxu0 %v3109_v10 }
  0x33   : > { %v684_v4 = vsel %vm4278_vm7, %v3432_v41, %v682_v3  ;;  %v3119_v3 = vld [vmem:[%s4267_s4 + $0x20] sm:$0xff] }
  0x34   : > { %v686_v5 = vsel %vm4277_vm8, %v3436_v0, %v684_v4 }
  0x35   : > { %688 = vadd.xlane.f32.xlu0 %v686_v5 }
  0x36   : > { %936 = vmatpush.bf16.msra.mxu0 %v3108_v11 }
  0x3a   : > { %937 = vmatpush.bf16.msra.mxu0 %v3107_v12 }
  0x3e   : > { %938 = vmatpush.bf16.msra.mxu0 %v3106_v13 }
  0xa8   : > { %v689_v14 = vpop.xlane.xlu0 %688 }
  0xa9   : > { %v690_v15 = vadd.f32 1e-05, %v689_v14 }
  0xab   : > { %v3452_v16 = vrot.slane %v690_v15, 1  ;;  %v3454_v17 = vrot.slane %v690_v15, 2  ;;  %v3456_v18 = vrot.slane %v690_v15, 3  ;;  %3272 = vrcp.f32 %v690_v15 }
  0xac   : > { %v3459_v19 = vrot.slane %v690_v15, 4  ;;  %v716_v20 = vand.u32 2147483647, %v690_v15  ;;  %v718_v21 = vand.u32 2147483648, %v690_v15  ;;  %v3464_v23 = vrot.slane %v690_v15, 5 }
  0xad   : > { %3274 = vrcp.f32 %v3452_v16  ;;  %v733_v22 = vand.u32 2147483648, %v3452_v16  ;;  %v3466_v24 = vrot.slane %v690_v15, 6  ;;  %v731_v25 = vand.u32 2147483647, %v3452_v16 }
  0xae   : > { %3276 = vrcp.f32 %v3454_v17  ;;  %v748_v26 = vand.u32 2147483648, %v3454_v17  ;;  %v3470_v28 = vrot.slane %v690_v15, 7  ;;  %vm712_vm9 = vweird.f32 %v690_v15 }
  0xaf   : > { %3278 = vrcp.f32 %v3456_v18  ;;  %v746_v29 = vand.u32 2147483647, %v3454_v17  ;;  %vm727_vm10 = vweird.f32 %v3452_v16  ;;  %v761_v32 = vand.u32 2147483647, %v3456_v18 }
  0xb0   : > { %3280 = vrcp.f32 %v3459_v19  ;;  %v763_v33 = vand.u32 2147483648, %v3456_v18  ;;  %vm3481_vm11 = vcmp.eq.f32.partialorder %v716_v20, 8.507059e+37  ;;  %v719_v36 = vor.u32 1.1754944e-38, %v718_v21 }
  0xb1   : > { %v3273_v27 = vpop.eup %3272  ;;  %v734_v38 = vor.u32 1.1754944e-38, %v733_v22  ;;  %vm742_vm12 = vweird.f32 %v3454_v17  ;;  %vm3488_vm13 = vcmp.eq.f32.partialorder %v731_v25, 8.507059e+37  ;;  %v749_v43 = vor.u32 1.1754944e-38, %v748_v26 }
  0xb2   : > { %v708_v31 = vmul.f32 %v3273_v27, %v690_v15  ;;  %vm757_vm14 = vweird.f32 %v3456_v18  ;;  %3282 = vrcp.f32 %v3464_v23  ;;  %vm713_vm15 = vweird.f32 %v3273_v27 }
  0xb3   : > { %v3474_v30 = vpop.eup %3274  ;;  %vm3496_vm0 = vcmp.eq.f32.partialorder %v746_v29, 8.507059e+37  ;;  %v776_v47 = vand.u32 2147483647, %v3459_v19  ;;  %v778_v48 = vand.u32 2147483648, %v3459_v19  ;;  %vm3503_vm1 = vcmp.eq.f32.partialorder %v761_v32, 8.507059e+37  ;;  %vm3516_vm5 = vmor %vm712_vm9, %vm713_vm15  ;;  %v3130_v32 = vld [vmem:[%s4268_s5 + $0x38] sm:$0xff] }
  0xb4   : > { %v3479_v34 = vpop.eup %3276  ;;  %v723_v37 = vmul.f32 %v3474_v30, %v3452_v16  ;;  %v709_v39 = vsub.f32 1.0, %v708_v31  ;;  %v764_v53 = vor.u32 1.1754944e-38, %v763_v33  ;;  %vm728_vm8 = vweird.f32 %v3474_v30  ;;  %1095 = vmatpush.bf16.msra.mxu2 %v3130_v32 }
  0xb5   : > { %v738_v42 = vmul.f32 %v3479_v34, %v3454_v17  ;;  %v3279_v44 = vpop.eup %3278  ;;  %vm743_vm7 = vweird.f32 %v3479_v34  ;;  %vm772_vm6 = vweird.f32 %v3459_v19  ;;  %3284 = vrcp.f32 %v3466_v24  ;;  %vm3532_vm9 = vmor %vm727_vm10, %vm728_vm8  ;;  %v3122_v17 = vld [vmem:[%s4267_s4 + $0x38] sm:$0xff] }
  0xb6   : > { %v724_v45 = vsub.f32 1.0, %v723_v37  ;;  %v710_v49 = vmul.f32 %v3273_v27, %v709_v39  ;;  %v753_v51 = vmul.f32 %v3279_v44, %v3456_v18  ;;  %v3281_v54 = vpop.eup %3280  ;;  %vm758_vm4 = vweird.f32 %v3279_v44  ;;  %1016 = vmatpush.bf16.msra.mxu1 %v3122_v17  ;;  %v3121_v18 = vld [vmem:[%s4267_s4 + $0x30] sm:$0xff] }
  0xb7   : > { %v739_v50 = vsub.f32 1.0, %v738_v42  ;;  %v768_v2 = vmul.f32 %v3281_v54, %v3459_v19  ;;  %vm3521_vm3 = vcmp.eq.f32.partialorder %v776_v47, 8.507059e+37  ;;  %v779_v6 = vor.u32 1.1754944e-38, %v778_v48 }
  0xb8   : > { %v725_v55 = vmul.f32 %v3474_v30, %v724_v45  ;;  %v711_v62 = vadd.f32 %v3273_v27, %v710_v49  ;;  %v754_v1 = vsub.f32 1.0, %v753_v51  ;;  %v793_v7 = vand.u32 2147483648, %v3464_v23  ;;  %v3283_v8 = vpop.eup %3282  ;;  %1096 = vmatpush.bf16.msra.mxu2 %v3129_v40 }
  0xb9   : > { %v740_v63 = vmul.f32 %v3479_v34, %v739_v50  ;;  %v769_v13 = vsub.f32 1.0, %v768_v2  ;;  %v783_v16 = vmul.f32 %v3283_v8, %v3464_v23  ;;  %vm787_vm8 = vweird.f32 %v3464_v23 }
  0xba   : > { %v726_v4 = vadd.f32 %v3474_v30, %v725_v55  ;;  %v715_v9 = vsel %vm3516_vm5, %v3273_v27, %v711_v62  ;;  %v755_v12 = vmul.f32 %v3279_v44, %v754_v1  ;;  %vm3544_vm5 = vmor %vm742_vm12, %vm743_vm7  ;;  %v791_v20 = vand.u32 2147483647, %v3464_v23  ;;  %1017 = vmatpush.bf16.msra.mxu1 %v3121_v18  ;;  %v3128_v23 = vld [vmem:[%s4268_s5 + $0x28] sm:$0xff] }
  0xbb   : > { %v741_v11 = vadd.f32 %v3479_v34, %v740_v63  ;;  %v720_v21 = vsel %vm3481_vm11, %v719_v36, %v715_v9  ;;  %vm773_vm10 = vweird.f32 %v3281_v54  ;;  %v3285_v26 = vpop.eup %3284  ;;  %vm759_vm7 = vmor %vm757_vm14, %vm758_vm4  ;;  %v770_v29 = vmul.f32 %v3281_v54, %v769_v13 }
  0xbc   : > { %v730_v14 = vsel %vm3532_vm9, %v3474_v30, %v726_v4  ;;  %v756_v25 = vadd.f32 %v3279_v44, %v755_v12  ;;  %v784_v30 = vsub.f32 1.0, %v783_v16  ;;  %v794_v31 = vor.u32 1.1754944e-38, %v793_v7  ;;  %vm774_vm4 = vmor %vm772_vm6, %vm773_vm10  ;;  %1097 = vmatpush.bf16.msra.mxu2 %v3128_v23 }
  0xbd   : > { %v745_v22 = vsel %vm3544_vm5, %v3479_v34, %v741_v11  ;;  %v735_v27 = vsel %vm3488_vm13, %v734_v38, %v730_v14  ;;  %vm788_vm11 = vweird.f32 %v3283_v8  ;;  %v798_v35 = vmul.f32 %v3285_v26, %v3466_v24 }
  0xbe   : > { %v750_v33 = vsel %vm3496_vm0, %v749_v43, %v745_v22  ;;  %v760_v34 = vsel %vm759_vm7, %v3279_v44, %v756_v25  ;;  %v721_v36 = vmul.f32 %v720_v21, %v3417_v56  ;;  %v771_v38 = vadd.f32 %v3281_v54, %v770_v29  ;;  %vm789_vm12 = vmor %vm787_vm8, %vm788_vm11  ;;  %v3126_v25 = vld [vmem:[%s4268_s5 + $0x18] sm:$0xff] }
  0xbf   : > { %v765_v37 = vsel %vm3503_vm1, %v764_v53, %v760_v34  ;;  %v785_v39 = vmul.f32 %v3283_v8, %v784_v30  ;;  %v736_v42 = vmul.f32 %v735_v27, %v3419_v57  ;;  %v799_v43 = vsub.f32 1.0, %v798_v35  ;;  %v3125_v35 = vld [vmem:[%s4268_s5 + $0x10] sm:$0xff] }
  0xc0   : > { %v808_v44 = vand.u32 2147483648, %v3466_v24  ;;  %3286 = vrcp.f32 %v3470_v28  ;;  %v751_v56 = vmul.f32 %v750_v33, %v3421_v58  ;;  %v766_v45 = vmul.f32 %v765_v37, %v3423_v59  ;;  %v3120_v58 = vld [vmem:[%s4267_s4 + $0x28] sm:$0xff]  ;;  %v3117_v33 = vld [vmem:[%s4267_s4 + $0x10] sm:$0xff] }
  0xc1   : > { %v775_v46 = vsel %vm774_vm4, %v3281_v54, %v771_v38  ;;  %v786_v47 = vadd.f32 %v3283_v8, %v785_v39  ;;  %v800_v57 = vmul.f32 %v3285_v26, %v799_v43  ;;  %vm803_vm6 = vweird.f32 %v3285_v26  ;;  %1018 = vmatpush.bf16.msra.mxu1 %v3120_v58  ;;  %v3116_v39 = vld [vmem:[%s4267_s4 + $0x8] sm:$0xff]  ;;  %v2813_v58 = vld [vmem:[%s4270_s7 + $0x1c0] sm:$0xf] }
  0xc2   : > { %v780_v48 = vsel %vm3521_vm3, %v779_v6, %v775_v46  ;;  %v806_v19 = vand.u32 2147483647, %v3466_v24  ;;  %vm792_vm13 = vcmp.eq.f32.partialorder %v791_v20, 8.507059e+37  ;;  %vm802_vm14 = vweird.f32 %v3466_v24  ;;  %v3118_v20 = vld [vmem:[%s4267_s4 + $0x18] sm:$0xff]  ;;  %v3124_v43 = vld [vmem:[%s4268_s5 + $0x8] sm:$0xff] }
  0xc3   : > { %v781_v59 = vmul.f32 %v780_v48, %v3425_v60  ;;  %v790_v49 = vsel %vm789_vm12, %v3283_v8, %v786_v47  ;;  %v801_v51 = vadd.f32 %v3285_v26, %v800_v57  ;;  %v809_v52 = vor.u32 1.1754944e-38, %v808_v44  ;;  %vm804_vm3 = vmor %vm802_vm14, %vm803_vm6  ;;  %v3114_v48 = vld [vmem:[%s520_s24] sm:$0xff]  ;;  %s4239_s24 = scalar_lea.vmem %s4275_s12, %s3105_s21 }
  0xc4   : > { %v795_v50 = vsel %vm792_vm13, %v794_v31, %v790_v49  ;;  %v828_v53 = vpack.c.bf16 %v736_v42, %v736_v42  ;;  %v827_v55 = vpack.c.bf16 %v721_v36, %v721_v36  ;;  %v829_v62 = vpack.c.bf16 %v751_v56, %v751_v56  ;;  %v3187_v49 = vld [vmem:[%s4270_s7 + $0x1c4] sm:$0xf] }
  0xc5   : > { %v796_v54 = vmul.f32 %v795_v50, %v3427_v61  ;;  %v830_v60 = vpack.c.bf16 %v766_v45, %v766_v45  ;;  %v805_v1 = vsel %vm804_vm3, %v3285_v26, %v801_v51  ;;  %vm807_vm15 = vcmp.eq.f32.partialorder %v806_v19, 8.507059e+37  ;;  %v3127_v61 = vld [vmem:[%s4268_s5 + $0x20] sm:$0xff]  ;;  %1019 = vmatpush.bf16.msra.mxu1 %v3119_v3  ;;  %v2821_v51 = vld [vmem:[%s4270_s7 + $0x1c8] sm:$0xf] }
  0xc6   : > { %v3287_v63 = vpop.eup %3286  ;;  %v831_v24 = vpack.c.bf16 %v781_v59, %v781_v59  ;;  %v860_v2 = vunpack.c.l.b16 %v828_v53  ;;  %v810_v4 = vsel %vm807_vm15, %v809_v52, %v805_v1  ;;  %v861_v7 = vunpack.c.l.b16 %v829_v62  ;;  %1098 = vmatpush.bf16.msra.mxu2 %v3127_v61  ;;  %v3115_v45 = vld [vmem:[%s4267_s4] sm:$0xff]  ;;  %v3192_v52 = vld [vmem:[%s4270_s7 + $0x1e4] sm:$0xf0]  ;;  %v2823_v62 = vld [vmem:[%s4270_s7 + $0x1e8] sm:$0xf0] }
  0xc7   : > { %v813_v5 = vmul.f32 %v3287_v63, %v3470_v28  ;;  %v811_v6 = vmul.f32 %v810_v4, %v3432_v41  ;;  %v862_v8 = vunpack.c.l.b16 %v830_v60  ;;  %v832_v10 = vpack.c.bf16 %v796_v54, %v796_v54  ;;  %v3123_v19 = vld [vmem:[%s4268_s5] sm:$0xff]  ;;  %v3184_v61 = vld [vmem:[%s4270_s7 + $0x1a4] sm:$0xf0] }
  0xc8   : > { %v859_v11 = vunpack.c.l.b16 %v827_v55  ;;  %v867_v12 = vrot.slane %v860_v2, 7  ;;  %v821_v13 = vand.u32 2147483647, %v3470_v28  ;;  %v823_v14 = vand.u32 2147483648, %v3470_v28  ;;  %v3191_v59 = vld [vmem:[%s4270_s7 + $0x1dc] sm:$0xf0] }
  0xc9   : > { %v814_v9 = vsub.f32 1.0, %v813_v5  ;;  %v863_v15 = vunpack.c.l.b16 %v831_v24  ;;  %v869_v16 = vrot.slane %v861_v7, 6  ;;  %vm818_vm0 = vweird.f32 %v3287_v63  ;;  %1020 = vmatpush.bf16.msra.mxu1 %v3118_v20  ;;  %v2815_v50 = vld [vmem:[%s4270_s7 + $0x1e0] sm:$0xf0]  ;;  %v3188_v55 = vld [vmem:[%s4270_s7 + $0x1cc] sm:$0xf] }
  0xca   : > { %v868_v41 = vsel %vm673_vm2, %v867_v12, %v859_v11  ;;  %v871_v22 = vrot.slane %v862_v8, 5  ;;  %v833_v17 = vpack.c.bf16 %v811_v6, %v811_v6  ;;  %vm4299_vm1 = vcmask 1042434   ;;  %1099 = vmatpush.bf16.msra.mxu2 %v3126_v25  ;;  %v2781_v60 = vld [vmem:[%s4270_s7 + $0x180] sm:$0xf]  ;;  %v3179_v24 = vld [vmem:[%s4270_s7 + $0x184] sm:$0xf] }
  0xcb   : > { %v815_v21 = vmul.f32 %v3287_v63, %v814_v9  ;;  %v870_v26 = vsel %vm4299_vm1, %v869_v16, %v868_v41  ;;  %vm817_vm9 = vweird.f32 %v3470_v28  ;;  %v864_v29 = vunpack.c.l.b16 %v832_v10  ;;  %v3183_v1 = vld [vmem:[%s4270_s7 + $0x19c] sm:$0xf0]  ;;  %v2783_v2 = vld [vmem:[%s4270_s7 + $0x1a0] sm:$0xf0]  ;;  %v2789_v5 = vld [vmem:[%s4270_s7 + $0x188] sm:$0xf] }
  0xcc   : > { %vm4300_vm5 = vcmask 1043459   ;;  %vm819_vm8 = vmor %vm817_vm9, %vm818_vm0  ;;  %v824_v31 = vor.u32 1.1754944e-38, %v823_v14  ;;  %v873_v32 = vrot.slane %v863_v15, 4  ;;  %vm822_vm2 = vcmp.eq.f32.partialorder %v821_v13, 8.507059e+37  ;;  %v3180_v6 = vld [vmem:[%s4270_s7 + $0x18c] sm:$0xf] }
  0xcd   : > { %v816_v27 = vadd.f32 %v3287_v63, %v815_v21  ;;  %v872_v30 = vsel %vm4300_vm5, %v871_v22, %v870_v26  ;;  %v865_v18 = vunpack.c.l.b16 %v833_v17  ;;  %vm4301_vm10 = vcmask 1044484   ;;  %1021 = vmatpush.bf16.msra.mxu1 %v3117_v33  ;;  %v2791_v8 = vld [vmem:[%s4270_s7 + $0x1a8] sm:$0xf0]  ;;  %v2749_v9 = vld [vmem:[%s4270_s7 + $0x140] sm:$0xf] }
  0xce   : > { %v874_v36 = vsel %vm4301_vm10, %v873_v32, %v872_v30  ;;  %v875_v38 = vrot.slane %v864_v29, 3  ;;  %vm4302_vm7 = vcmask 1045509   ;;  %1100 = vmatpush.bf16.msra.mxu2 %v3125_v35  ;;  %vm4303_vm11 = vcmask 1046534   ;;  %v3175_v10 = vld [vmem:[%s4270_s7 + $0x15c] sm:$0xf0] }
  0xcf   : > { %v820_v34 = vsel %vm819_vm8, %v3287_v63, %v816_v27  ;;  %v877_v44 = vrot.slane %v865_v18, 2  ;;  %vm4304_vm4 = vcmask 1047559   ;;  %v2814_v23 = vor.u32 %v3191_v59, %v2813_v58  ;;  %v3171_v12 = vld [vmem:[%s4270_s7 + $0x144] sm:$0xf]  ;;  %v2757_v14 = vld [vmem:[%s4270_s7 + $0x148] sm:$0xf] }
  0xd0   : > { %v825_v28 = vsel %vm822_vm2, %v824_v31, %v820_v34  ;;  %v876_v42 = vsel %vm4302_vm7, %v875_v38, %v874_v36  ;;  %v2818_v53 = vor.u32 %v3187_v49, %v2815_v50  ;;  %v2822_v54 = vor.u32 %v3192_v52, %v2821_v51  ;;  %v2751_v13 = vld [vmem:[%s4270_s7 + $0x160] sm:$0xf0]  ;;  %v3176_v16 = vld [vmem:[%s4270_s7 + $0x164] sm:$0xf0]  ;;  %v3172_v20 = vld [vmem:[%s4270_s7 + $0x14c] sm:$0xf] }
  0xd1   : > { %v826_v37 = vmul.f32 %v825_v28, %v3436_v0  ;;  %v878_v0 = vsel %vm4303_vm11, %v877_v44, %v876_v42  ;;  %1022 = vmatpush.bf16.msra.mxu1 %v3116_v39  ;;  %1503 = vmatpush.bf16.msra.mxu3 %v2814_v23  ;;  %v2826_v63 = vor.u32 %v3188_v55, %v2823_v62  ;;  %v2759_v21 = vld [vmem:[%s4270_s7 + $0x168] sm:$0xf0]  ;;  %v2717_v25 = vld [vmem:[%s4270_s7 + $0x100] sm:$0xf]  ;;  %v3163_v26 = vld [vmem:[%s4270_s7 + $0x104] sm:$0xf] }
  0xd2   : > { %1101 = vmatpush.bf16.msra.mxu2 %v3124_v43  ;;  %1516 = vmatpush.bf16.msrb.mxu0 %v2818_v53  ;;  %v2782_v3 = vor.u32 %v3183_v1, %v2781_v60  ;;  %v2786_v4 = vor.u32 %v3179_v24, %v2783_v2  ;;  %v2790_v7 = vor.u32 %v3184_v61, %v2789_v5  ;;  %v3167_v17 = vld [vmem:[%s4270_s7 + $0x11c] sm:$0xf0]  ;;  %v2719_v29 = vld [vmem:[%s4270_s7 + $0x120] sm:$0xf0]  ;;  %v2725_v30 = vld [vmem:[%s4270_s7 + $0x108] sm:$0xf] }
  0xd3   : > { %v834_v40 = vpack.c.bf16 %v826_v37, %v826_v37  ;;  %v2794_v11 = vor.u32 %v3180_v6, %v2791_v8  ;;  %v2750_v15 = vor.u32 %v3175_v10, %v2749_v9  ;;  %v2754_v41 = vor.u32 %v3171_v12, %v2751_v13  ;;  %v3168_v31 = vld [vmem:[%s4270_s7 + $0x124] sm:$0xf0]  ;;  %v3164_v32 = vld [vmem:[%s4270_s7 + $0x10c] sm:$0xf]  ;;  %v2685_v18 = vld [vmem:[%s4270_s7 + $0xc0] sm:$0xf] }
  0xd4   : > { %v2758_v22 = vor.u32 %v3176_v16, %v2757_v14  ;;  %v2762_v27 = vor.u32 %v3172_v20, %v2759_v21  ;;  %v2727_v33 = vld [vmem:[%s4270_s7 + $0x128] sm:$0xf0]  ;;  %v2718_v34 = vor.u32 %v3167_v17, %v2717_v25  ;;  %v2722_v35 = vor.u32 %v3163_v26, %v2719_v29  ;;  %v3159_v36 = vld [vmem:[%s4270_s7 + $0xdc] sm:$0xf0]  ;;  %v3155_v37 = vld [vmem:[%s4270_s7 + $0xc4] sm:$0xf] }
  0xd5   : > { %v866_v56 = vunpack.c.l.b16 %v834_v40  ;;  %1023 = vmatpush.bf16.msra.mxu1 %v3115_v45  ;;  %1504 = vmatpush.bf16.msra.mxu3 %v2782_v3  ;;  %v2726_v28 = vor.u32 %v3168_v31, %v2725_v30  ;;  %v2730_v38 = vor.u32 %v3164_v32, %v2727_v33  ;;  %v2687_v39 = vld [vmem:[%s4270_s7 + $0xe0] sm:$0xf0]  ;;  %v2693_v40 = vld [vmem:[%s4270_s7 + $0xc8] sm:$0xf]  ;;  %v3156_v43 = vld [vmem:[%s4270_s7 + $0xcc] sm:$0xf] }
  0xd6   : > { %1102 = vmatpush.bf16.msra.mxu2 %v3123_v19  ;;  %1517 = vmatpush.bf16.msrb.mxu0 %v2786_v4  ;;  %v3160_v42 = vld [vmem:[%s4270_s7 + $0xe4] sm:$0xf0]  ;;  %v2695_v44 = vld [vmem:[%s4270_s7 + $0xe8] sm:$0xf0]  ;;  %v2655_v19 = vld [vmem:[%s4270_s7 + $0xa0] sm:$0xf0] }
  0xd7   : > { %v879_v46 = vrot.slane %v866_v56, 1  ;;  %v2686_v56 = vor.u32 %v3159_v36, %v2685_v18  ;;  %v2694_v45 = vor.u32 %v3160_v42, %v2693_v40  ;;  %v2661_v58 = vld [vmem:[%s4270_s7 + $0x88] sm:$0xf]  ;;  %v3148_v49 = vld [vmem:[%s4270_s7 + $0x8c] sm:$0xf] }
  0xd8   : > { %1024 = vmatmul.bf16.vlgmr.msra.gmra.mxu1 %v3114_v48  ;;  %v3147_v48 = vld [vmem:[%s4270_s7 + $0x84] sm:$0xf]  ;;  %v3152_v59 = vld [vmem:[%s4270_s7 + $0xa4] sm:$0xf0]  ;;  %v2663_v23 = vld [vmem:[%s4270_s7 + $0xa8] sm:$0xf0] }
  0xd9   : > { %v880_v47 = vsel %vm4304_vm4, %v879_v46, %v878_v0  ;;  %1529 = vmatpush.bf16.msrb.mxu1 %v2822_v54  ;;  %1505 = vmatpush.bf16.msra.mxu3 %v2750_v15  ;;  %v2690_v0 = vor.u32 %v3155_v37, %v2687_v39  ;;  %v2653_v46 = vld [vmem:[%s4270_s7 + $0x80] sm:$0xf]  ;;  %v2658_v51 = vor.u32 %v3147_v48, %v2655_v19  ;;  %v3139_v55 = vld [vmem:[%s4270_s7 + $0x44] sm:$0xf]  ;;  %v3144_v1 = vld [vmem:[%s4270_s7 + $0x64] sm:$0xf0] }
  0xda   : > { %v881_v57 = vpack.c.b16 %v880_v47, %v880_v47  ;;  %1542 = vmatpush.bf16.msrb.mxu2 %v2826_v63  ;;  %1518 = vmatpush.bf16.msrb.mxu0 %v2754_v41  ;;  %v3151_v47 = vld [vmem:[%s4270_s7 + $0x9c] sm:$0xf0]  ;;  %v2662_v52 = vor.u32 %v3152_v59, %v2661_v58  ;;  %v2666_v62 = vor.u32 %v3148_v49, %v2663_v23  ;;  %v2623_v60 = vld [vmem:[%s4270_s7 + $0x60] sm:$0xf0]  ;;  %v2629_v63 = vld [vmem:[%s4270_s7 + $0x48] sm:$0xf] }
  0xdb   : > { %v2654_v50 = vor.u32 %v3151_v47, %v2653_v46  ;;  %v2621_v53 = vld [vmem:[%s4270_s7 + $0x40] sm:$0xf]  ;;  %v3140_v24 = vld [vmem:[%s4270_s7 + $0x4c] sm:$0xf]  ;;  %v2626_v6 = vor.u32 %v3139_v55, %v2623_v60  ;;  %v3131_v8 = vld [vmem:[%s4270_s7 + $0x4] sm:$0xf] }
  0xdc   : > { %939 = vmatmul.bf16.vlgmr.msra.gmra.mxu0 %v881_v57  ;;  %v2698_v57 = vor.u32 %v3156_v43, %v2695_v44  ;;  %v3143_v54 = vld [vmem:[%s4270_s7 + $0x5c] sm:$0xf0]  ;;  %v2631_v2 = vld [vmem:[%s4270_s7 + $0x68] sm:$0xf0]  ;;  %v2591_v9 = vld [vmem:[%s4270_s7 + $0x20] sm:$0xf0] }
  0xdd   : > { %1530 = vmatpush.bf16.msrb.mxu1 %v2790_v7  ;;  %1506 = vmatpush.bf16.msra.mxu3 %v2718_v34  ;;  %v2622_v3 = vor.u32 %v3143_v54, %v2621_v53  ;;  %v2589_v4 = vld [vmem:[%s4270_s7] sm:$0xf]  ;;  %v2630_v7 = vor.u32 %v3144_v1, %v2629_v63  ;;  %v2597_v10 = vld [vmem:[%s4270_s7 + $0x8] sm:$0xf]  ;;  %v2634_v12 = vor.u32 %v3140_v24, %v2631_v2  ;;  %v3132_v14 = vld [vmem:[%s4270_s7 + $0xc] sm:$0xf] }
  0xde   : > { %1543 = vmatpush.bf16.msrb.mxu2 %v2794_v11  ;;  %1519 = vmatpush.bf16.msrb.mxu0 %v2722_v35  ;;  %v3135_v5 = vld [vmem:[%s4270_s7 + $0x1c] sm:$0xf0]  ;;  %v3136_v13 = vld [vmem:[%s4270_s7 + $0x24] sm:$0xf0]  ;;  %v2599_v15 = vld [vmem:[%s4270_s7 + $0x28] sm:$0xf0]  ;;  %v2594_v26 = vor.u32 %v3131_v8, %v2591_v9 }
  0xdf   : > { %v2829_v16 = vld [vmem:[%s4270_s7 + $0x1d0] sm:$0xf]  ;;  %v3189_v21 = vld [vmem:[%s4270_s7 + $0x1d4] sm:$0xf]  ;;  %v2590_v41 = vor.u32 %v3135_v5, %v2589_v4  ;;  %v2837_v25 = vld [vmem:[%s4270_s7 + $0x1d8] sm:$0xf]  ;;  %v2602_v31 = vor.u32 %v3132_v14, %v2599_v15 }
  0xe0   : > { %v3193_v20 = vld [vmem:[%s4270_s7 + $0x1ec] sm:$0xf0]  ;;  %v3194_v17 = vld [vmem:[%s4270_s7 + $0x1f4] sm:$0xf0]  ;;  %v3190_v29 = vld [vmem:[%s4270_s7 + $0x1dc] sm:$0xf] }
  0xe1   : > { %1531 = vmatpush.bf16.msrb.mxu1 %v2758_v22  ;;  %1507 = vmatpush.bf16.msra.mxu3 %v2686_v56  ;;  %v2831_v22 = vld [vmem:[%s4270_s7 + $0x1f0] sm:$0xf0]  ;;  %v2839_v30 = vld [vmem:[%s4270_s7 + $0x1f8] sm:$0xf0]  ;;  %v2830_v32 = vor.u32 %v3193_v20, %v2829_v16  ;;  %v2838_v34 = vor.u32 %v3194_v17, %v2837_v25  ;;  %v2797_v18 = vld [vmem:[%s4270_s7 + $0x190] sm:$0xf] }
  0xe2   : > { %1544 = vmatpush.bf16.msrb.mxu2 %v2762_v27  ;;  %1520 = vmatpush.bf16.msrb.mxu0 %v2690_v0  ;;  %v2598_v27 = vor.u32 %v3136_v13, %v2597_v10  ;;  %v2834_v33 = vor.u32 %v3189_v21, %v2831_v22  ;;  %v2842_v35 = vor.u32 %v3190_v29, %v2839_v30  ;;  %v3185_v36 = vld [vmem:[%s4270_s7 + $0x1ac] sm:$0xf0]  ;;  %v3181_v37 = vld [vmem:[%s4270_s7 + $0x194] sm:$0xf]  ;;  %v2805_v40 = vld [vmem:[%s4270_s7 + $0x198] sm:$0xf] }
  0xe3   : > { %v2799_v39 = vld [vmem:[%s4270_s7 + $0x1b0] sm:$0xf0]  ;;  %v3186_v42 = vld [vmem:[%s4270_s7 + $0x1b4] sm:$0xf0]  ;;  %v3182_v56 = vld [vmem:[%s4270_s7 + $0x19c] sm:$0xf] }
  0xe4   : > { %v2802_v43 = vor.u32 %v3181_v37, %v2799_v39  ;;  %v2806_v44 = vor.u32 %v3186_v42, %v2805_v40  ;;  %v2807_v0 = vld [vmem:[%s4270_s7 + $0x1b8] sm:$0xf0]  ;;  %v2765_v46 = vld [vmem:[%s4270_s7 + $0x150] sm:$0xf]  ;;  %v3173_v48 = vld [vmem:[%s4270_s7 + $0x154] sm:$0xf] }
  0xe5   : > { %1532 = vmatpush.bf16.msrb.mxu1 %v2726_v28  ;;  %1508 = vmatpush.bf16.msra.mxu3 %v2654_v50  ;;  %v3177_v47 = vld [vmem:[%s4270_s7 + $0x16c] sm:$0xf0]  ;;  %v2767_v19 = vld [vmem:[%s4270_s7 + $0x170] sm:$0xf0]  ;;  %v2773_v58 = vld [vmem:[%s4270_s7 + $0x158] sm:$0xf] }
  0xe6   : > { %1545 = vmatpush.bf16.msrb.mxu2 %v2730_v38  ;;  %1521 = vmatpush.bf16.msrb.mxu0 %v2658_v51  ;;  %v2798_v38 = vor.u32 %v3185_v36, %v2797_v18  ;;  %v3178_v59 = vld [vmem:[%s4270_s7 + $0x174] sm:$0xf0]  ;;  %v2770_v49 = vor.u32 %v3173_v48, %v2767_v19  ;;  %v3174_v50 = vld [vmem:[%s4270_s7 + $0x15c] sm:$0xf]  ;;  %v3169_v54 = vld [vmem:[%s4270_s7 + $0x12c] sm:$0xf0] }
  0xe7   : > { %v2774_v23 = vor.u32 %v3178_v59, %v2773_v58  ;;  %v2775_v51 = vld [vmem:[%s4270_s7 + $0x178] sm:$0xf0]  ;;  %v3165_v55 = vld [vmem:[%s4270_s7 + $0x114] sm:$0xf]  ;;  %v2741_v1 = vld [vmem:[%s4270_s7 + $0x118] sm:$0xf] }
  0xe8   : > { %v2778_v53 = vor.u32 %v3174_v50, %v2775_v51  ;;  %v3170_v24 = vld [vmem:[%s4270_s7 + $0x134] sm:$0xf0]  ;;  %v3166_v2 = vld [vmem:[%s4270_s7 + $0x11c] sm:$0xf]  ;;  %v2701_v5 = vld [vmem:[%s4270_s7 + $0xd0] sm:$0xf] }
  0xe9   : > { %1533 = vmatpush.bf16.msrb.mxu1 %v2694_v45  ;;  %1509 = vmatpush.bf16.msra.mxu3 %v2622_v3  ;;  %v2810_v45 = vor.u32 %v3182_v56, %v2807_v0  ;;  %v2742_v3 = vor.u32 %v3170_v24, %v2741_v1  ;;  %v2743_v4 = vld [vmem:[%s4270_s7 + $0x138] sm:$0xf0]  ;;  %v2703_v8 = vld [vmem:[%s4270_s7 + $0xf0] sm:$0xf0]  ;;  %v2709_v9 = vld [vmem:[%s4270_s7 + $0xd8] sm:$0xf] }
  0xea   : > { %1546 = vmatpush.bf16.msrb.mxu2 %v2698_v57  ;;  %1522 = vmatpush.bf16.msrb.mxu0 %v2626_v6  ;;  %v2766_v57 = vor.u32 %v3177_v47, %v2765_v46  ;;  %v2746_v6 = vor.u32 %v3166_v2, %v2743_v4  ;;  %v2711_v13 = vld [vmem:[%s4270_s7 + $0xf8] sm:$0xf0]  ;;  %v2669_v16 = vld [vmem:[%s4270_s7 + $0x90] sm:$0xf]  ;;  %v3149_v21 = vld [vmem:[%s4270_s7 + $0x94] sm:$0xf] }
  0xeb   : > { %v3153_v20 = vld [vmem:[%s4270_s7 + $0xac] sm:$0xf0]  ;;  %v2671_v25 = vld [vmem:[%s4270_s7 + $0xb0] sm:$0xf0]  ;;  %v2677_v17 = vld [vmem:[%s4270_s7 + $0x98] sm:$0xf] }
  0xec   : > { %v2679_v29 = vld [vmem:[%s4270_s7 + $0xb8] sm:$0xf0]  ;;  %v2670_v30 = vor.u32 %v3153_v20, %v2669_v16  ;;  %v2639_v18 = vld [vmem:[%s4270_s7 + $0x70] sm:$0xf0]  ;;  %v2645_v36 = vld [vmem:[%s4270_s7 + $0x58] sm:$0xf] }
  0xed   : > { %1534 = vmatpush.bf16.msrb.mxu1 %v2662_v52  ;;  %1510 = vmatpush.bf16.msra.mxu3 %v2590_v41  ;;  %v2733_v52 = vld [vmem:[%s4270_s7 + $0x110] sm:$0xf]  ;;  %v3146_v37 = vld [vmem:[%s4270_s7 + $0x74] sm:$0xf0]  ;;  %v2647_v39 = vld [vmem:[%s4270_s7 + $0x78] sm:$0xf0] }
  0xee   : > { %1547 = vmatpush.bf16.msrb.mxu2 %v2666_v62  ;;  %1523 = vmatpush.bf16.msrb.mxu0 %v2594_v26  ;;  %v2735_v62 = vld [vmem:[%s4270_s7 + $0x130] sm:$0xf0]  ;;  %v2734_v60 = vor.u32 %v3169_v54, %v2733_v52  ;;  %v3154_v26 = vld [vmem:[%s4270_s7 + $0xb4] sm:$0xf0]  ;;  %v2605_v42 = vld [vmem:[%s4270_s7 + $0x10] sm:$0xf] }
  0xef   : > { %v2738_v63 = vor.u32 %v3165_v55, %v2735_v62  ;;  %v3137_v56 = vld [vmem:[%s4270_s7 + $0x2c] sm:$0xf0]  ;;  %v3133_v0 = vld [vmem:[%s4270_s7 + $0x14] sm:$0xf]  ;;  %v2613_v47 = vld [vmem:[%s4270_s7 + $0x18] sm:$0xf] }
  0xf0   : > { %v3138_v48 = vld [vmem:[%s4270_s7 + $0x34] sm:$0xf0]  ;;  %v3134_v19 = vld [vmem:[%s4270_s7 + $0x1c] sm:$0xf] }
  0xf1   : > { %1535 = vmatpush.bf16.msrb.mxu1 %v2630_v7  ;;  %1555 = vmatpush.bf16.msrb.mxu3 %v2830_v32  ;;  %v3157_v7 = vld [vmem:[%s4270_s7 + $0xd4] sm:$0xf]  ;;  %v2678_v32 = vor.u32 %v3154_v26, %v2677_v17  ;;  %v2615_v58 = vld [vmem:[%s4270_s7 + $0x38] sm:$0xf0] }
  0xf2   : > { %1548 = vmatpush.bf16.msrb.mxu2 %v2634_v12  ;;  %1568 = vmatpush.bf16.msra.mxu0 %v2834_v33  ;;  %v3158_v12 = vld [vmem:[%s4270_s7 + $0xdc] sm:$0xf]  ;;  %v2706_v14 = vor.u32 %v3157_v7, %v2703_v8  ;;  %v2637_v33 = vld [vmem:[%s4270_s7 + $0x50] sm:$0xf]  ;;  %v2618_v54 = vor.u32 %v3134_v19, %v2615_v58  ;;  %v3200_v8 = vld [vmem:[%s4271_s8 + $0x28] sm:$0xff] }
  0xf3   : > { %v2714_v22 = vor.u32 %v3158_v12, %v2711_v13  ;;  %v3202_v24 = vld [vmem:[%s4271_s8 + $0x38] sm:$0xff]  ;;  %v3225_v7 = vld [vmem:[%s4271_s8 + $0xf0] sm:$0xff]  ;;  %v3199_v12 = vld [vmem:[%s4271_s8 + $0x20] sm:$0xff] }
  0xf4   : > { %v3210_v2 = vld [vmem:[%s4271_s8 + $0x78] sm:$0xff]  ;;  %v3207_v13 = vld [vmem:[%s4271_s8 + $0x60] sm:$0xff]  ;;  %v3213_v17 = vld [vmem:[%s4271_s8 + $0x90] sm:$0xff] }
  0xf5   : > { %1536 = vmatpush.bf16.msrb.mxu1 %v2598_v27  ;;  %1556 = vmatpush.bf16.msrb.mxu3 %v2798_v38  ;;  %v3150_v27 = vld [vmem:[%s4270_s7 + $0x9c] sm:$0xf]  ;;  %v3221_v26 = vld [vmem:[%s4271_s8 + $0xd0] sm:$0xff] }
  0xf6   : > { %1549 = vmatpush.bf16.msrb.mxu2 %v2602_v31  ;;  %1569 = vmatpush.bf16.msra.mxu0 %v2802_v43  ;;  %v2674_v31 = vor.u32 %v3149_v21, %v2671_v25  ;;  %v3142_v38 = vld [vmem:[%s4270_s7 + $0x5c] sm:$0xf]  ;;  %v3205_v25 = vld [vmem:[%s4271_s8 + $0x50] sm:$0xff] }
  0xf7   : > { %v2650_v46 = vor.u32 %v3142_v38, %v2647_v39  ;;  %v3226_v4 = vld [vmem:[%s4271_s8 + $0xf8] sm:$0xff]  ;;  %v3233_v38 = vld [vmem:[%s4271_s8 + $0x130] sm:$0xff] }
  0xf8   : > { %v3198_v16 = vld [vmem:[%s4271_s8 + $0x18] sm:$0xff]  ;;  %v3241_v39 = vld [vmem:[%s4271_s8 + $0x170] sm:$0xff] }
  0xf9   : > { %1581 = vmatpush.bf16.msra.mxu1 %v2838_v34  ;;  %1557 = vmatpush.bf16.msrb.mxu3 %v2766_v57  ;;  %v3145_v34 = vld [vmem:[%s4270_s7 + $0x6c] sm:$0xf0]  ;;  %v3268_v57 = vld [vmem:[%s4269_s6] ss:$0 sm:$0xff]  ;;  %v3206_v20 = vld [vmem:[%s4271_s8 + $0x58] sm:$0xff] }
  0xfa   : > { %1570 = vmatpush.bf16.msra.mxu0 %v2770_v49  ;;  %v2638_v40 = vor.u32 %v3145_v34, %v2637_v33  ;;  %v3214_v21 = vld [vmem:[%s4271_s8 + $0x98] sm:$0xff]  ;;  %v3203_v33 = vld [vmem:[%s4271_s8 + $0x40] sm:$0xff] }
  0xfb   : > { %v3211_v34 = vld [vmem:[%s4271_s8 + $0x80] sm:$0xff]  ;;  %v3238_v19 = vld [vmem:[%s4271_s8 + $0x158] sm:$0xff] }
  0xfc   : > { %v3246_v58 = vld [vmem:[%s4271_s8 + $0x198] sm:$0xff] }
  0xfd   : > { %1582 = vmatpush.bf16.msra.mxu1 %v2806_v44  ;;  %1558 = vmatpush.bf16.msrb.mxu3 %v2734_v60  ;;  %v2646_v44 = vor.u32 %v3146_v37, %v2645_v36  ;;  %v3250_v36 = vld [vmem:[%s4271_s8 + $0x1b8] sm:$0xff] }
  0xfe   : > { %1571 = vmatpush.bf16.msra.mxu0 %v2738_v63  ;;  %v3258_v37 = vld [vmem:[%s4271_s8 + $0x1f8] sm:$0xff] }
 0x101   : > { %1583 = vmatpush.bf16.msra.mxu1 %v2774_v23  ;;  %v2606_v23 = vor.u32 %v3137_v56, %v2605_v42  ;;  %v3257_v42 = vld [vmem:[%s4271_s8 + $0x1f0] sm:$0xff]  ;;  %v3248_v56 = vld [vmem:[%s4271_s8 + $0x1a8] sm:$0xff] }
 0x102   : > { %1572 = vmatpush.bf16.msra.mxu0 %v2706_v14  ;;  %v3215_v14 = vld [vmem:[%s4271_s8 + $0xa0] sm:$0xff] }
 0x105   : > { %1584 = vmatpush.bf16.msra.mxu1 %v2742_v3  ;;  %v3218_v3 = vld [vmem:[%s4271_s8 + $0xb8] sm:$0xff] }
 0x106   : > { %1573 = vmatpush.bf16.msra.mxu0 %v2674_v31  ;;  %v3220_v31 = vld [vmem:[%s4271_s8 + $0xc8] sm:$0xff] }
 0x155   : > { %v1025_v41 = vpop.f32.mrf.mxu1 }
 0x159   : > { %v940_v61 = vpop.f32.mrf.mxu0 }
 0x15a   : > { %v1030_v11 = vpack.c.bf16 %v940_v61, %v940_v61  ;;  %v3161_v61 = vld [vmem:[%s4270_s7 + $0xec] sm:$0xf0] }
 0x15b   : > { %v2702_v10 = vor.u32 %v3161_v61, %v2701_v5  ;;  %v3201_v5 = vld [vmem:[%s4271_s8 + $0x30] sm:$0xff] }
 0x15c   : > { %1103 = vmatmul.bf16.vlgmr.msra.gmra.mxu2 %v1030_v11  ;;  %v3162_v11 = vld [vmem:[%s4270_s7 + $0xf4] sm:$0xf0]  ;;  %v3209_v61 = vld [vmem:[%s4271_s8 + $0x70] sm:$0xff] }
 0x15d   : > { %1594 = vmatpush.bf16.msra.mxu2 %v2842_v35  ;;  %v2710_v15 = vor.u32 %v3162_v11, %v2709_v9  ;;  %1559 = vmatpush.bf16.msrb.mxu3 %v2702_v10  ;;  %v3141_v35 = vld [vmem:[%s4270_s7 + $0x54] sm:$0xf]  ;;  %v1027_v59 = vpop.f32.mrf.mxu1  ;;  %v3208_v9 = vld [vmem:[%s4271_s8 + $0x68] sm:$0xff] }
 0x15e   : > { %v2642_v43 = vor.u32 %v3141_v35, %v2639_v18  ;;  %v3216_v10 = vld [vmem:[%s4271_s8 + $0xa8] sm:$0xff]  ;;  %v3219_v35 = vld [vmem:[%s4271_s8 + $0xc0] sm:$0xff]  ;;  %v3242_v18 = vld [vmem:[%s4271_s8 + $0x178] sm:$0xff] }
 0x15f   : > { %1585 = vmatpush.bf16.msra.mxu1 %v2710_v15  ;;  %v3224_v11 = vld [vmem:[%s4271_s8 + $0xe8] sm:$0xff]  ;;  %v3223_v15 = vld [vmem:[%s4271_s8 + $0xe0] sm:$0xff] }
 0x160   : > { %1574 = vmatpush.bf16.msra.mxu0 %v2642_v43  ;;  %v3232_v43 = vld [vmem:[%s4271_s8 + $0x128] sm:$0xff] }
 0x161   : > { %v942_v28 = vpop.f32.mrf.mxu0  ;;  %1595 = vmatpush.bf16.msra.mxu2 %v2810_v45  ;;  %1560 = vmatpush.bf16.msrb.mxu3 %v2670_v30  ;;  %v2607_v45 = vld [vmem:[%s4270_s7 + $0x30] sm:$0xf0]  ;;  %v3212_v30 = vld [vmem:[%s4271_s8 + $0x88] sm:$0xff] }
 0x162   : > { %v2682_v28 = vor.u32 %v3150_v27, %v2679_v29  ;;  %v2610_v50 = vor.u32 %v3133_v0, %v2607_v45  ;;  %v3196_v27 = vld [vmem:[%s4271_s8 + $0x8] sm:$0xff]  ;;  %v3231_v45 = vld [vmem:[%s4271_s8 + $0x120] sm:$0xff] }
 0x163   : > { %1586 = vmatpush.bf16.msra.mxu1 %v2678_v32  ;;  %v3204_v29 = vld [vmem:[%s4271_s8 + $0x48] sm:$0xff]  ;;  %v3195_v32 = vld [vmem:[%s4271_s8] sm:$0xff] }
 0x164   : > { %1575 = vmatpush.bf16.msra.mxu0 %v2610_v50  ;;  %v3256_v0 = vld [vmem:[%s4271_s8 + $0x1e8] sm:$0xff]  ;;  %v3245_v50 = vld [vmem:[%s4271_s8 + $0x190] sm:$0xff] }
 0x165   : > { %1596 = vmatpush.bf16.msra.mxu2 %v2778_v53  ;;  %1561 = vmatpush.bf16.msrb.mxu3 %v2638_v40  ;;  %v2614_v53 = vor.u32 %v3138_v48, %v2613_v47  ;;  %v3249_v40 = vld [vmem:[%s4271_s8 + $0x1b0] sm:$0xff]  ;;  %v3247_v47 = vld [vmem:[%s4271_s8 + $0x1a0] sm:$0xff] }
 0x166   : > { %v3255_v48 = vld [vmem:[%s4271_s8 + $0x1e0] sm:$0xff] }
 0x167   : > { %1587 = vmatpush.bf16.msra.mxu1 %v2646_v44  ;;  %v3240_v44 = vld [vmem:[%s4271_s8 + $0x168] sm:$0xff] }
 0x169   : > { %1597 = vmatpush.bf16.msra.mxu2 %v2746_v6  ;;  %1562 = vmatpush.bf16.msrb.mxu3 %v2606_v23  ;;  %v3217_v6 = vld [vmem:[%s4271_s8 + $0xb0] sm:$0xff] }
 0x16a   : > { %v3237_v23 = vld [vmem:[%s4271_s8 + $0x150] sm:$0xff] }
 0x16b   : > { %1588 = vmatpush.bf16.msra.mxu1 %v2614_v53  ;;  %v3236_v53 = vld [vmem:[%s4271_s8 + $0x148] sm:$0xff] }
 0x16d   : > { %1598 = vmatpush.bf16.msra.mxu2 %v2714_v22  ;;  %v3197_v22 = vld [vmem:[%s4271_s8 + $0x10] sm:$0xff] }
 0x171   : > { %1599 = vmatpush.bf16.msra.mxu2 %v2682_v28  ;;  %v3234_v28 = vld [vmem:[%s4271_s8 + $0x138] sm:$0xff] }
 0x175   : > { %1600 = vmatpush.bf16.msra.mxu2 %v2650_v46  ;;  %v3239_v46 = vld [vmem:[%s4271_s8 + $0x160] sm:$0xff] }
 0x179   : > { %1601 = vmatpush.bf16.msra.mxu2 %v2618_v54  ;;  %v3244_v54 = vld [vmem:[%s4271_s8 + $0x188] sm:$0xff] }
 0x1df   : > { %v1104_v49 = vpop.f32.mrf.mxu2 }
 0x1e0   : > { %v1109_v51 = vadd.f32 %v1104_v49, %v1025_v41  ;;  %v1115_v52 = vadd.f32 %v1104_v49, %v1027_v59  ;;  %v3222_v41 = vld [vmem:[%s4271_s8 + $0xd8] sm:$0xff]  ;;  %v3229_v49 = vld [vmem:[%s4271_s8 + $0x110] sm:$0xff] }
 0x1e1   : > { %v3254_v59 = vld [vmem:[%s4271_s8 + $0x1d8] sm:$0xff] }
 0x1e2   : > { %v4040_v55 = vadd.f32 %v3268_v57, %v1109_v51  ;;  %v1116_v62 = vadd.f32 %v3268_v57, %v1115_v52  ;;  %v3230_v57 = vld [vmem:[%s4271_s8 + $0x118] sm:$0xff]  ;;  %v3253_v51 = vld [vmem:[%s4271_s8 + $0x1d0] sm:$0xff]  ;;  %v3228_v52 = vld [vmem:[%s4271_s8 + $0x108] sm:$0xff] }
 0x1e4   : > { %3288 = vtanh.f32 %v1116_v62  ;;  %v3252_v62 = vld [vmem:[%s4271_s8 + $0x1c8] sm:$0xff] }
 0x1e5   : > { %3290 = vtanh.f32 %v4040_v55 }
 0x1e7   : > { %v1106_v60 = vpop.f32.mrf.mxu2 }
 0x1e8   : > { %v3227_v60 = vld [vmem:[%s4271_s8 + $0x100] sm:$0xff] }
 0x1ea   : > { %v3289_v63 = vpop.eup %3288 }
 0x1eb   : > { %v1118_v1 = vpack.c.bf16 %v3289_v63, %v3289_v63  ;;  %v3235_v63 = vld [vmem:[%s4271_s8 + $0x140] sm:$0xff] }
 0x1ed   : > { %1511 = vmatmul.bf16.vlgmr.msra.gmra.mxu3 %v1118_v1  ;;  %1524 = vmatmul.bf16.vlgmr.msrb.gmra.mxu0 %v1118_v1 }
 0x1ee   : > { %1537 = vmatmul.bf16.vlgmr.msrb.gmra.mxu1 %v1118_v1  ;;  %1550 = vmatmul.bf16.vlgmr.msrb.gmra.mxu2 %v1118_v1 }
 0x1ef   : > { %2167 = vmatpush.bf16.msra.mxu3 %v3202_v24  ;;  %2180 = vmatpush.bf16.msrb.mxu0 %v3210_v2  ;;  %v3251_v24 = vld [vmem:[%s4271_s8 + $0x1c0] sm:$0xff] }
 0x1f0   : > { %2193 = vmatpush.bf16.msrb.mxu1 %v3218_v3  ;;  %2206 = vmatpush.bf16.msrb.mxu2 %v3226_v4  ;;  %v3291_v4 = vpop.eup %3290 }
 0x1f3   : > { %2168 = vmatpush.bf16.msra.mxu3 %v3201_v5  ;;  %2181 = vmatpush.bf16.msrb.mxu0 %v3209_v61 }
 0x1f4   : > { %2194 = vmatpush.bf16.msrb.mxu1 %v3217_v6  ;;  %2207 = vmatpush.bf16.msrb.mxu2 %v3225_v7 }
 0x1f7   : > { %2169 = vmatpush.bf16.msra.mxu3 %v3200_v8  ;;  %2182 = vmatpush.bf16.msrb.mxu0 %v3208_v9 }
 0x1f8   : > { %2195 = vmatpush.bf16.msrb.mxu1 %v3216_v10  ;;  %2208 = vmatpush.bf16.msrb.mxu2 %v3224_v11 }
 0x1fb   : > { %2170 = vmatpush.bf16.msra.mxu3 %v3199_v12  ;;  %2183 = vmatpush.bf16.msrb.mxu0 %v3207_v13 }
 0x1fc   : > { %2196 = vmatpush.bf16.msrb.mxu1 %v3215_v14  ;;  %2209 = vmatpush.bf16.msrb.mxu2 %v3223_v15 }
 0x1fd   : > { %1563 = vmatmul.bf16.vlgmr.msrb.gmra.mxu3 %v1118_v1  ;;  %1576 = vmatmul.bf16.vlgmr.msra.gmra.mxu0 %v1118_v1 }
 0x1fe   : > { %1589 = vmatmul.bf16.vlgmr.msra.gmra.mxu1 %v1118_v1  ;;  %1602 = vmatmul.bf16.vlgmr.msra.gmra.mxu2 %v1118_v1  ;;  %v3243_v1 = vld [vmem:[%s4271_s8 + $0x180] sm:$0xff] }
 0x1ff   : > { %2171 = vmatpush.bf16.msra.mxu3 %v3198_v16  ;;  %2184 = vmatpush.bf16.msrb.mxu0 %v3206_v20 }
 0x200   : > { %2197 = vmatpush.bf16.msrb.mxu1 %v3214_v21  ;;  %2210 = vmatpush.bf16.msrb.mxu2 %v3222_v41 }
 0x203   : > { %2172 = vmatpush.bf16.msra.mxu3 %v3197_v22  ;;  %2185 = vmatpush.bf16.msrb.mxu0 %v3205_v25 }
 0x204   : > { %2198 = vmatpush.bf16.msrb.mxu1 %v3213_v17  ;;  %2211 = vmatpush.bf16.msrb.mxu2 %v3221_v26 }
 0x207   : > { %2173 = vmatpush.bf16.msra.mxu3 %v3196_v27  ;;  %2186 = vmatpush.bf16.msrb.mxu0 %v3204_v29 }
 0x208   : > { %2199 = vmatpush.bf16.msrb.mxu1 %v3212_v30  ;;  %2212 = vmatpush.bf16.msrb.mxu2 %v3220_v31 }
 0x20b   : > { %2174 = vmatpush.bf16.msra.mxu3 %v3195_v32  ;;  %2187 = vmatpush.bf16.msrb.mxu0 %v3203_v33 }
 0x20c   : > { %2200 = vmatpush.bf16.msrb.mxu1 %v3211_v34  ;;  %2213 = vmatpush.bf16.msrb.mxu2 %v3219_v35 }
 0x20f   : > { %2219 = vmatpush.bf16.msrb.mxu3 %v3234_v28  ;;  %2232 = vmatpush.bf16.msra.mxu0 %v3242_v18 }
 0x210   : > { %2245 = vmatpush.bf16.msra.mxu1 %v3250_v36  ;;  %2258 = vmatpush.bf16.msra.mxu2 %v3258_v37 }
 0x213   : > { %2220 = vmatpush.bf16.msrb.mxu3 %v3233_v38  ;;  %2233 = vmatpush.bf16.msra.mxu0 %v3241_v39 }
 0x214   : > { %2246 = vmatpush.bf16.msra.mxu1 %v3249_v40  ;;  %2259 = vmatpush.bf16.msra.mxu2 %v3257_v42 }
 0x217   : > { %2221 = vmatpush.bf16.msrb.mxu3 %v3232_v43  ;;  %2234 = vmatpush.bf16.msra.mxu0 %v3240_v44 }
 0x218   : > { %2247 = vmatpush.bf16.msra.mxu1 %v3248_v56  ;;  %2260 = vmatpush.bf16.msra.mxu2 %v3256_v0 }
 0x21b   : > { %2222 = vmatpush.bf16.msrb.mxu3 %v3231_v45  ;;  %2235 = vmatpush.bf16.msra.mxu0 %v3239_v46 }
 0x21c   : > { %2248 = vmatpush.bf16.msra.mxu1 %v3247_v47  ;;  %2261 = vmatpush.bf16.msra.mxu2 %v3255_v48  ;;  %v3269_v48 = vld [vmem:[%s4272_s9] ss:$0 sm:$0xff] }
 0x21f   : > { %2223 = vmatpush.bf16.msrb.mxu3 %v3230_v57  ;;  %2236 = vmatpush.bf16.msra.mxu0 %v3238_v19 }
 0x220   : > { %2249 = vmatpush.bf16.msra.mxu1 %v3246_v58  ;;  %2262 = vmatpush.bf16.msra.mxu2 %v3254_v59 }
 0x223   : > { %2224 = vmatpush.bf16.msrb.mxu3 %v3229_v49  ;;  %2237 = vmatpush.bf16.msra.mxu0 %v3237_v23 }
 0x224   : > { %2250 = vmatpush.bf16.msra.mxu1 %v3245_v50  ;;  %2263 = vmatpush.bf16.msra.mxu2 %v3253_v51 }
 0x227   : > { %2225 = vmatpush.bf16.msrb.mxu3 %v3228_v52  ;;  %2238 = vmatpush.bf16.msra.mxu0 %v3236_v53 }
 0x228   : > { %2251 = vmatpush.bf16.msra.mxu1 %v3244_v54  ;;  %2264 = vmatpush.bf16.msra.mxu2 %v3252_v62  ;;  %v2272_v62 = vlaneseq }
 0x22b   : > { %2226 = vmatpush.bf16.msrb.mxu3 %v3227_v60  ;;  %2239 = vmatpush.bf16.msra.mxu0 %v3235_v63 }
 0x22c   : > { %2252 = vmatpush.bf16.msra.mxu1 %v3243_v1  ;;  %2265 = vmatpush.bf16.msra.mxu2 %v3251_v24 }
 0x26a   : > { %v1525_v2 = vpop.f32.mrf.mxu0 }
 0x26b   : > { %v1538_v3 = vpop.f32.mrf.mxu1  ;;  %v1608_v61 = vmul.f32 %v3291_v4, %v1525_v2 }
 0x26c   : > { %v1609_v8 = vmul.f32 %v3291_v4, %v1538_v3  ;;  %v2273_v3 = vand.u32 127, %v2272_v62 }
 0x26e   : > { %vm2274_vm12 = vcmp.lt.s32.totalorder %v2273_v3, 4  ;;  %vm2307_vm6 = vcmp.eq.s32.totalorder %v2273_v3, 1  ;;  %vm2306_vm13 = vcmp.eq.s32.totalorder %v2273_v3, 0 }
 0x270   : > { %v1512_v5 = vpop.f32.mrf.mxu3 }
 0x271   : > { %v1607_v6 = vmul.f32 %v3291_v4, %v1512_v5  ;;  %v1551_v7 = vpop.f32.mrf.mxu2 }
 0x272   : > { %v1610_v55 = vmul.f32 %v3291_v4, %v1551_v7  ;;  %v1527_v9 = vpop.f32.mrf.mxu0 }
 0x273   : > { %v1615_v10 = vpack.c.bf16 %v1608_v61, %v1607_v6  ;;  %v1540_v11 = vpop.f32.mrf.mxu1  ;;  %v2286_v6 = vld [vmem:[%s524_s14] sm:$0xff] }
 0x274   : > { %v1616_v12 = vpack.c.bf16 %v1610_v55, %v1609_v8 }
 0x275   : > { %1619 = vst [vmem:[%s4239_s24] sm:$0xff] %v1615_v10  ;;  %v1759_v13 = vunpack.c.l.b16 %v1615_v10  ;;  %v1760_v14 = vunpack.c.h.b16 %v1615_v10 }
 0x276   : > { %1620 = vst [vmem:[%s4239_s24 + $0x8] sm:$0xff] %v1616_v12  ;;  %v1761_v15 = vunpack.c.l.b16 %v1616_v12  ;;  %v1762_v16 = vunpack.c.h.b16 %v1616_v12 }
 0x277   : > { %v1767_v20 = vpack.c.b16 %v1759_v13, %v1759_v13  ;;  %v1768_v21 = vpack.c.b16 %v1760_v14, %v1760_v14 }
 0x278   : > { %v1514_v41 = vpop.f32.mrf.mxu3  ;;  %v1769_v22 = vpack.c.b16 %v1761_v15, %v1761_v15  ;;  %v1770_v25 = vpack.c.b16 %v1762_v16, %v1762_v16 }
 0x279   : > { %v1553_v17 = vpop.f32.mrf.mxu2  ;;  %2175 = vmatmul.bf16.vlgmr.msra.gmra.mxu3 %v1767_v20  ;;  %2188 = vmatmul.bf16.vlgmr.msrb.gmra.mxu0 %v1768_v21 }
 0x27a   : > { %2201 = vmatmul.bf16.vlgmr.msrb.gmra.mxu1 %v1769_v22  ;;  %2214 = vmatmul.bf16.vlgmr.msrb.gmra.mxu2 %v1770_v25  ;;  %v1577_v26 = vpop.f32.mrf.mxu0 }
 0x27b   : > { %v1590_v27 = vpop.f32.mrf.mxu1  ;;  %v1612_v30 = vmul.f32 %v3291_v4, %v1577_v26 }
 0x27c   : > { %v1613_v33 = vmul.f32 %v3291_v4, %v1590_v27 }
 0x280   : > { %v1564_v29 = vpop.f32.mrf.mxu3 }
 0x281   : > { %v1611_v31 = vmul.f32 %v3291_v4, %v1564_v29  ;;  %v1603_v32 = vpop.f32.mrf.mxu2 }
 0x282   : > { %v1614_v34 = vmul.f32 %v3291_v4, %v1603_v32  ;;  %v1579_v35 = vpop.f32.mrf.mxu0 }
 0x283   : > { %v1617_v28 = vpack.c.bf16 %v1612_v30, %v1611_v31  ;;  %v1592_v18 = vpop.f32.mrf.mxu1 }
 0x284   : > { %v1618_v36 = vpack.c.bf16 %v1614_v34, %v1613_v33 }
 0x285   : > { %1621 = vst [vmem:[%s4239_s24 + $0x10] sm:$0xff] %v1617_v28  ;;  %v1763_v37 = vunpack.c.l.b16 %v1617_v28  ;;  %v1764_v38 = vunpack.c.h.b16 %v1617_v28 }
 0x286   : > { %1622 = vst [vmem:[%s4239_s24 + $0x18] sm:$0xff] %v1618_v36  ;;  %v1765_v39 = vunpack.c.l.b16 %v1618_v36  ;;  %v1766_v40 = vunpack.c.h.b16 %v1618_v36 }
 0x287   : > { %v1771_v42 = vpack.c.b16 %v1763_v37, %v1763_v37  ;;  %v1772_v43 = vpack.c.b16 %v1764_v38, %v1764_v38 }
 0x288   : > { %v1566_v44 = vpop.f32.mrf.mxu3  ;;  %v1773_v56 = vpack.c.b16 %v1765_v39, %v1765_v39  ;;  %v1774_v0 = vpack.c.b16 %v1766_v40, %v1766_v40 }
 0x289   : > { %v1605_v45 = vpop.f32.mrf.mxu2  ;;  %2227 = vmatmul.bf16.vlgmr.msrb.gmra.mxu3 %v1771_v42  ;;  %2240 = vmatmul.bf16.vlgmr.msra.gmra.mxu0 %v1772_v43 }
 0x28a   : > { %2253 = vmatmul.bf16.vlgmr.msra.gmra.mxu1 %v1773_v56  ;;  %2266 = vmatmul.bf16.vlgmr.msra.gmra.mxu2 %v1774_v0 }
 0x2f6   : > { %v2189_v46 = vpop.f32.mrf.mxu0 }
 0x2f7   : > { %v2202_v47 = vpop.f32.mrf.mxu1 }
 0x2fc   : > { %v2176_v57 = vpop.f32.mrf.mxu3 }
 0x2fd   : > { %v2215_v19 = vpop.f32.mrf.mxu2  ;;  %v2177_v59 = vadd.f32 %v3269_v48, %v2176_v57 }
 0x2fe   : > { %v2191_v58 = vpop.f32.mrf.mxu0 }
 0x2ff   : > { %v2204_v49 = vpop.f32.mrf.mxu1  ;;  %v2190_v23 = vadd.f32 %v2189_v46, %v2177_v59 }
 0x301   : > { %v2203_v53 = vadd.f32 %v2202_v47, %v2190_v23 }
 0x303   : > { %v2216_v60 = vadd.f32 %v2215_v19, %v2203_v53 }
 0x304   : > { %v2178_v50 = vpop.f32.mrf.mxu3 }
 0x305   : > { %v2217_v51 = vpop.f32.mrf.mxu2 }
 0x306   : > { %v2241_v52 = vpop.f32.mrf.mxu0 }
 0x307   : > { %v2254_v54 = vpop.f32.mrf.mxu1 }
 0x30c   : > { %v2228_v63 = vpop.f32.mrf.mxu3 }
 0x30d   : > { %v2229_v1 = vadd.f32 %v2228_v63, %v2216_v60  ;;  %v2267_v24 = vpop.f32.mrf.mxu2 }
 0x30e   : > { %v2243_v2 = vpop.f32.mrf.mxu0 }
 0x30f   : > { %v2242_v4 = vadd.f32 %v2241_v52, %v2229_v1  ;;  %v2256_v5 = vpop.f32.mrf.mxu1 }
 0x311   : > { %v2255_v61 = vadd.f32 %v2254_v54, %v2242_v4 }
 0x313   : > { %v2268_v7 = vadd.f32 %v2267_v24, %v2255_v61 }
 0x314   : > { %v2230_v8 = vpop.f32.mrf.mxu3 }
 0x315   : > { %2271 = vst [vmem:[%s528_s18] sm:$0xff] %v2268_v7  ;;  %v2269_v55 = vpop.f32.mrf.mxu2  ;;  %v2275_v9 = vsel %vm2274_vm12, %v2268_v7, -1e+30  ;;  %v2289_v10 = vmul.f32 %v2286_v6, %v2268_v7 }
 0x316   : > { %2276 = vmax.xlane.f32.xlu0 %v2275_v9 }
 0x317   : > { %2290 = vadd.xlane.f32.xlu2 %v2289_v10 }
 0x389   : > { %v2277_v11 = vpop.xlane.xlu0 %2276 }
 0x38a   : > { %v2278_v12 = vsub.f32 %v2275_v9, %v2277_v11  ;;  %v2291_v26 = vpop.xlane.xlu2 %2290 }
 0x38c   : > { %v2279_v13 = vmul.f32 1.442695, %v2278_v12 }
 0x38e   : > { %3292 = vpow2.f32 %v2279_v13 }
 0x394   : > { %v3293_v14 = vpop.eup %3292 }
 0x395   : > { %2281 = vadd.xlane.f32.xlu1 %v3293_v14 }
 0x39d   : > { %2287 = vadd.xlane.f32.xlu1 %v2286_v6 }
 0x408   : > { %v2282_v15 = vpop.xlane.xlu1 %2281 }
 0x409   : > { %3294 = vlog2.f32 %v2282_v15 }
 0x40f   : > { %v3295_v16 = vpop.eup %3294 }
 0x410   : > { %v2284_v20 = vmul.f32 0.6931472, %v3295_v16  ;;  %v2288_v21 = vpop.xlane.xlu1 %2287 }
 0x411   : > { %v2300_v41 = vrot.slane %v2288_v21, 4 }
 0x412   : > { %v2285_v22 = vadd.f32 %v2284_v20, %v2277_v11 }
 0x413   : > { %v2301_v25 = vadd.f32 %v2300_v41, %v2288_v21 }
 0x414   : > { %v2292_v17 = vmul.f32 %v2288_v21, %v2285_v22 }
 0x415   : > { %v2302_v27 = vrot.slane %v2301_v25, 2 }
 0x416   : > { %v2293_v29 = vsub.f32 %v2292_v17, %v2291_v26 }
 0x417   : > { %v2303_v30 = vadd.f32 %v2302_v27, %v2301_v25 }
 0x418   : > { %v2294_v31 = vrot.slane %v2293_v29, 4 }
 0x419   : > { %v2304_v33 = vrot.slane %v2303_v30, 1 }
 0x41a   : > { %v2295_v32 = vadd.f32 %v2294_v31, %v2293_v29 }
 0x41b   : > { %v2305_v28 = vadd.f32 %v2304_v33, %v2303_v30 }
 0x41c   : > { %v2296_v34 = vrot.slane %v2295_v32, 2 }
 0x41d   : > { %v2308_v37 = vsel %vm2307_vm6, %v2305_v28, 0.0 }
 0x41e   : > { %v2297_v35 = vadd.f32 %v2296_v34, %v2295_v32 }
 0x420   : > { %v2298_v18 = vrot.slane %v2297_v35, 1 }
 0x422   : > { %v2299_v36 = vadd.f32 %v2298_v18, %v2297_v35 }
 0x424   : > { %v2309_v38 = vsel %vm2306_vm13, %v2299_v36, %v2308_v37 }
 0x425   : > { %2310 = vst [vmem:[%s536_s20] sm:$0x1] %v2309_v38 }
 0x426 PF: > { %s24_s25 = sadd.s32 1, %s3302_s25  }
 0x427   : > { %p21_p4 = scmp.ge.s32.totalorder %s24_s25, 4  }
 0x429   :  { %23 = sbr.rel (!%p21_p4) target bundleno = 1 (0x1), region = 130 }

</bundles_post_ra>
